<compile_context>
chip_gen: v7x
topology: tpu7x:2x2x1
jax: 0.10.0
libtpu: 0.0.40
codegen_flags: <defaults>
</compile_context>

<pallas_src>
import math

import jax
import jax.numpy as jnp
from jax import lax
from jax.experimental import pallas as pl
from jax.experimental.pallas import tpu as pltpu

# ---- small-BERT config (synthetic) ------------------------------------------
VOCAB = 128
HIDDEN = 32
NUM_HEADS = 4
HEAD_DIM = HIDDEN // NUM_HEADS
INTERMEDIATE = 64
NUM_LAYERS = 2
MAX_POS = 16
LN_EPS = 1e-12


def _layer_norm(x, gamma, beta):
    mu = jnp.mean(x, axis=-1, keepdims=True)
    var = jnp.mean((x - mu) ** 2, axis=-1, keepdims=True)
    return (x - mu) * lax.rsqrt(var + LN_EPS) * gamma + beta


def _gelu(x):
    # TODO(synk): HF BERT uses exact erf-GELU; tanh approximation keeps the
    # transcendental on the EUP (numerical delta ~1e-3).
    c = 0.7978845608028654  # sqrt(2/pi)
    return 0.5 * x * (1.0 + jnp.tanh(c * (x + 0.044715 * x * x * x)))


# ---- Pallas kernel: embeddings + all encoder layers + mean(dim=1), one launch ----
def _make_bert_kernel(B, S):
    """Fused kernel closed over static batch/seq sizes."""
    BS = B * S
    H = HIDDEN

    def kernel(ids_ref, mask_ref, wemb_ref, embv_ref,
               wqkv_ref, bqkv_ref, wo_ref, w1_ref, b1_ref, w2_ref, lnb_ref,
               out_ref):
        # ---------------- embedding prologue (fused) ----------------
        # Word-embedding lookup as a one-hot MXU select: [BS,VOCAB] x [VOCAB,H].
        ids = ids_ref[...]                                            # [BS,1] int32
        sel = jnp.where(
            lax.broadcasted_iota(jnp.int32, (BS, VOCAB), 1) == ids,
            1.0, 0.0).astype(jnp.bfloat16)                            # [BS,VOCAB]
        x = jnp.dot(sel, wemb_ref[...],
                    preferred_element_type=jnp.float32)               # [BS,H] f32

        embv = embv_ref[...]                    # [MAX_POS+3, H] f32: pos | type0 | ln_g | ln_b
        pos = embv[0:S, :]                                            # [S,H]
        x = x + embv[MAX_POS:MAX_POS + 1, :]                          # token-type-0 emb
        x = (x.reshape(B, S, H) + pos[None, :, :]).reshape(BS, H)     # + position emb
        x = _layer_norm(x, embv[MAX_POS + 1:MAX_POS + 2, :],
                        embv[MAX_POS + 2:MAX_POS + 3, :])

        # Additive attention mask, built + broadcast ONCE (hoisted out of loops).
        madd = (1.0 - mask_ref[...]) * -1e9                           # [B,S]
        mask_b = jnp.broadcast_to(madd[:, None, :], (B, S, S))        # [B,S,S]

        # ---------------- encoder layers (static unroll, weights VMEM-resident) ----
        for l in range(NUM_LAYERS):
            wqkv = wqkv_ref[l]          # [H,3H] bf16 (1/sqrt(HEAD_DIM) folded into q cols)
            bqkv = bqkv_ref[l]          # [1,3H] f32
            wo, w1, w2 = wo_ref[l], w1_ref[l], w2_ref[l]              # bf16
            b1 = b1_ref[l]              # [1,I] f32
            lnb = lnb_ref[l]            # [6,H] f32: bo | ln1_g | ln1_b | b2 | ln2_g | ln2_b

            # Fused QKV projection: one [BS,H]x[H,3H] push, bf16 operands, f32 accum.
            qkv = jnp.dot(x.astype(jnp.bfloat16), wqkv,
                          preferred_element_type=jnp.float32) + bqkv
            qkv3 = qkv.astype(jnp.bfloat16).reshape(B, S, 3 * H)

            # Multi-head attention: per-head 3-D einsums batched over B; heads are
            # re-joined once so Wo is a single full-width MXU push.
            # TODO(synk): collapse the head loop into one 'bqhd,bkhd->bhqk' einsum
            #             once Mosaic lowers dot_general with two batch dims.
            ctx_parts = []
            for h in range(NUM_HEADS):                                # static unroll
                lo = h * HEAD_DIM
                q_h = qkv3[..., lo:lo + HEAD_DIM]
                k_h = qkv3[..., H + lo:H + lo + HEAD_DIM]
                v_h = qkv3[..., 2 * H + lo:2 * H + lo + HEAD_DIM]

                s = jnp.einsum('bqd,bkd->bqk', q_h, k_h,
                               preferred_element_type=jnp.float32)    # [B,S,S] f32
                s = s + mask_b
                s = s - jnp.max(s, axis=-1, keepdims=True)
                p = jnp.exp(s)
                p = p * pl.reciprocal(jnp.sum(p, axis=-1, keepdims=True),
                                      approx=True)
                ctx_h = jnp.einsum('bqk,bkd->bqd', p.astype(jnp.bfloat16), v_h,
                                   preferred_element_type=jnp.float32)  # [B,S,HD]
                ctx_parts.append(ctx_h.reshape(BS, HEAD_DIM))
            ctx = jnp.concatenate(ctx_parts, axis=-1)                 # [BS,H] f32

            # Single output projection for all heads.
            attn = jnp.dot(ctx.astype(jnp.bfloat16), wo,
                           preferred_element_type=jnp.float32) + lnb[0:1, :]
            h1 = _layer_norm(x + attn, lnb[1:2, :], lnb[2:3, :])

            # FFN: bf16 matmul operands, GELU in f32.
            ff = _gelu(jnp.dot(h1.astype(jnp.bfloat16), w1,
                               preferred_element_type=jnp.float32) + b1)
            ff = jnp.dot(ff.astype(jnp.bfloat16), w2,
                         preferred_element_type=jnp.float32) + lnb[3:4, :]
            x = _layer_norm(h1 + ff, lnb[4:5, :], lnb[5:6, :])

        # ---------------- epilogue: out_mean = mean(last_hidden_state, dim=1) -------
        out_ref[...] = jnp.mean(x.reshape(B, S, H), axis=1).astype(out_ref.dtype)

    return kernel


def bert_forward(input_ids, attention_mask, params):
    """input_ids: [B,S] int32, attention_mask: [B,S]. Returns [B, HIDDEN] mean."""
    B, S = input_ids.shape
    ids2 = input_ids.reshape(B * S, 1).astype(jnp.int32)
    mask = attention_mask.astype(jnp.float32)

    kernel = _make_bert_kernel(B, S)
    vmem = pl.BlockSpec(memory_space=pltpu.MemorySpace.VMEM)
    return pl.pallas_call(
        kernel,
        out_shape=jax.ShapeDtypeStruct((B, HIDDEN), jnp.float32),
        in_specs=[vmem] * 11,
        out_specs=vmem,
    )(ids2, mask, params["wemb"], params["embv"],
      params["wqkv"], params["bqkv"], params["wo"],
      params["w1"], params["b1"], params["w2"], params["lnb"])


bert_forward_jit = jax.jit(bert_forward)


# ---- parameter init (deterministic, synthetic, packed & pre-cast) ------------
def init_params(key):
    keys = iter(jax.random.split(key, 16))

    def rnd(shape):
        return jax.random.normal(next(keys), shape, jnp.float32) * 0.02

    L, H, I = NUM_LAYERS, HIDDEN, INTERMEDIATE
    scale = 1.0 / math.sqrt(HEAD_DIM)
    bf16 = jnp.bfloat16

    # embeddings
    word_emb = rnd((VOCAB, H))
    pos_emb = rnd((MAX_POS, H))
    type_emb = rnd((2, H))
    emb_ln_g = jnp.ones((1, H), jnp.float32)
    emb_ln_b = jnp.zeros((1, H), jnp.float32)

    # encoder weights, stacked along a leading layer axis
    wq, wk, wv, wo = rnd((L, H, H)), rnd((L, H, H)), rnd((L, H, H)), rnd((L, H, H))
    bq, bk, bv, bo = rnd((L, 1, H)), rnd((L, 1, H)), rnd((L, 1, H)), rnd((L, 1, H))
    w1, b1 = rnd((L, H, I)), rnd((L, 1, I))
    w2, b2 = rnd((L, I, H)), rnd((L, 1, H))
    ln1_g = jnp.ones((L, 1, H), jnp.float32)
    ln1_b = jnp.zeros((L, 1, H), jnp.float32)
    ln2_g = jnp.ones((L, 1, H), jnp.float32)
    ln2_b = jnp.zeros((L, 1, H), jnp.float32)

    return {
        # word-embedding table (used via one-hot MXU select) -> bf16 matmul operand
        "wemb": word_emb.astype(bf16),
        # f32 pack: rows [0:MAX_POS) = pos_emb, then type0, emb_ln_g, emb_ln_b
        "embv": jnp.concatenate([pos_emb, type_emb[0:1], emb_ln_g, emb_ln_b], axis=0),
        # fused QKV weight/bias with 1/sqrt(HEAD_DIM) folded into the q slice
        "wqkv": jnp.concatenate([wq * scale, wk, wv], axis=-1).astype(bf16),  # [L,H,3H]
        "bqkv": jnp.concatenate([bq * scale, bk, bv], axis=-1),               # [L,1,3H]
        "wo": wo.astype(bf16),
        "w1": w1.astype(bf16), "b1": b1,
        "w2": w2.astype(bf16),
        # per-layer H-wide vectors packed: bo | ln1_g | ln1_b | b2 | ln2_g | ln2_b
        "lnb": jnp.concatenate([bo, ln1_g, ln1_b, b2, ln2_g, ln2_b], axis=1),  # [L,6,H]
    }


if __name__ == "__main__":
    key = jax.random.PRNGKey(0)
    k_ids, k_params = jax.random.split(key)

    B, S = 2, 8
    input_ids = jax.random.randint(k_ids, (B, S), 0, VOCAB, dtype=jnp.int32)
    attention_mask = jnp.array(
        [[1, 1, 1, 1, 1, 1, 1, 1],
         [1, 1, 1, 1, 1, 1, 0, 0]], dtype=jnp.float32)

    params = init_params(k_params)
    out = bert_forward_jit(input_ids, attention_mask, params)
    out = jax.block_until_ready(out)

    assert out.shape == (B, HIDDEN)
    assert bool(jnp.all(jnp.isfinite(out)))
    print("KERNEL_OK")
</pallas_src>

<mosaic_0001>
module attributes {stable_mosaic.version = 11 : i64} {
  func.func @kernel(%arg0: memref<16x1xi32, #tpu.memory_space<vmem>>, %arg1: memref<2x8xf32, #tpu.memory_space<vmem>>, %arg2: memref<128x32xbf16, #tpu.memory_space<vmem>>, %arg3: memref<19x32xf32, #tpu.memory_space<vmem>>, %arg4: memref<2x32x96xbf16, #tpu.memory_space<vmem>>, %arg5: memref<2x1x96xf32, #tpu.memory_space<vmem>>, %arg6: memref<2x32x32xbf16, #tpu.memory_space<vmem>>, %arg7: memref<2x32x64xbf16, #tpu.memory_space<vmem>>, %arg8: memref<2x1x64xf32, #tpu.memory_space<vmem>>, %arg9: memref<2x64x32xbf16, #tpu.memory_space<vmem>>, %arg10: memref<2x6x32xf32, #tpu.memory_space<vmem>>, %arg11: memref<2x32xf32, #tpu.memory_space<vmem>>) attributes {dimension_semantics = [], scalar_prefetch = 0 : i64, scratch_operands = 0 : i64, tpu.core_type = #tpu.core_type<tc>} {
    %c0 = arith.constant 0 : index
    %c0_0 = arith.constant 0 : index
    %0 = vector.load %arg0[%c0, %c0_0] : memref<16x1xi32, #tpu.memory_space<vmem>>, vector<16x1xi32>
    %1 = tpu.iota {dimensions = array<i32: 1>} : vector<16x128xi32>
    %2 = vector.broadcast %0 : vector<16x1xi32> to vector<16x128xi32>
    %3 = arith.cmpi eq, %1, %2 : vector<16x128xi32>
    %cst = arith.constant 1.000000e+00 : f32
    %cst_1 = arith.constant 0.000000e+00 : f32
    %4 = vector.broadcast %cst : f32 to vector<16x128xf32>
    %5 = vector.broadcast %cst_1 : f32 to vector<16x128xf32>
    %6 = arith.select %3, %4, %5 : vector<16x128xi1>, vector<16x128xf32>
    %7 = arith.truncf %6 : vector<16x128xf32> to vector<16x128xbf16>
    %c0_2 = arith.constant 0 : index
    %c0_3 = arith.constant 0 : index
    %8 = vector.load %arg2[%c0_2, %c0_3] : memref<128x32xbf16, #tpu.memory_space<vmem>>, vector<128x32xbf16>
    %cst_4 = arith.constant dense<0.000000e+00> : vector<16x32xf32>
    %9 = tpu.matmul %7, %8, %cst_4 {dimension_numbers = #tpu.dot_dimension_numbers<[1], [0], [0], [1], [0, 0, 1, 1], [], []>} : vector<16x128xbf16>, vector<128x32xbf16>, vector<16x32xf32> -> vector<16x32xf32>
    %c0_5 = arith.constant 0 : index
    %c0_6 = arith.constant 0 : index
    %10 = vector.load %arg3[%c0_5, %c0_6] : memref<19x32xf32, #tpu.memory_space<vmem>>, vector<19x32xf32>
    %11 = vector.extract_strided_slice %10 {offsets = [0, 0], sizes = [8, 32], strides = [1, 1]} : vector<19x32xf32> to vector<8x32xf32>
    %12 = vector.extract_strided_slice %10 {offsets = [16, 0], sizes = [1, 32], strides = [1, 1]} : vector<19x32xf32> to vector<1x32xf32>
    %13 = vector.broadcast %12 : vector<1x32xf32> to vector<16x32xf32>
    %14 = arith.addf %9, %13 : vector<16x32xf32>
    %15 = vector.shape_cast %14 : vector<16x32xf32> to vector<2x8x32xf32>
    %16 = vector.shape_cast %11 : vector<8x32xf32> to vector<1x8x32xf32>
    %17 = vector.broadcast %16 : vector<1x8x32xf32> to vector<2x8x32xf32>
    %18 = arith.addf %15, %17 : vector<2x8x32xf32>
    %19 = vector.shape_cast %18 : vector<2x8x32xf32> to vector<16x32xf32>
    %20 = vector.extract_strided_slice %10 {offsets = [17, 0], sizes = [1, 32], strides = [1, 1]} : vector<19x32xf32> to vector<1x32xf32>
    %21 = vector.extract_strided_slice %10 {offsets = [18, 0], sizes = [1, 32], strides = [1, 1]} : vector<19x32xf32> to vector<1x32xf32>
    %cst_7 = arith.constant dense<0.000000e+00> : vector<16xf32>
    %22 = vector.multi_reduction <add>, %19, %cst_7 [1] : vector<16x32xf32> to vector<16xf32>
    %23 = vector.shape_cast %22 : vector<16xf32> to vector<16x1xf32>
    %cst_8 = arith.constant 3.200000e+01 : f32
    %24 = vector.broadcast %cst_8 : f32 to vector<16x1xf32>
    %25 = arith.divf %23, %24 : vector<16x1xf32>
    %26 = vector.broadcast %25 : vector<16x1xf32> to vector<16x32xf32>
    %27 = arith.subf %19, %26 : vector<16x32xf32>
    %28 = arith.mulf %27, %27 : vector<16x32xf32>
    %cst_9 = arith.constant dense<0.000000e+00> : vector<16xf32>
    %29 = vector.multi_reduction <add>, %28, %cst_9 [1] : vector<16x32xf32> to vector<16xf32>
    %30 = vector.shape_cast %29 : vector<16xf32> to vector<16x1xf32>
    %cst_10 = arith.constant 3.200000e+01 : f32
    %31 = vector.broadcast %cst_10 : f32 to vector<16x1xf32>
    %32 = arith.divf %30, %31 : vector<16x1xf32>
    %33 = vector.broadcast %25 : vector<16x1xf32> to vector<16x32xf32>
    %34 = arith.subf %19, %33 : vector<16x32xf32>
    %cst_11 = arith.constant 9.99999996E-13 : f32
    %35 = vector.broadcast %cst_11 : f32 to vector<16x1xf32>
    %36 = arith.addf %32, %35 : vector<16x1xf32>
    %37 = math.rsqrt %36 : vector<16x1xf32>
    %38 = vector.broadcast %37 : vector<16x1xf32> to vector<16x32xf32>
    %39 = arith.mulf %34, %38 : vector<16x32xf32>
    %40 = vector.broadcast %20 : vector<1x32xf32> to vector<16x32xf32>
    %41 = arith.mulf %39, %40 : vector<16x32xf32>
    %42 = vector.broadcast %21 : vector<1x32xf32> to vector<16x32xf32>
    %43 = arith.addf %41, %42 : vector<16x32xf32>
    %c0_12 = arith.constant 0 : index
    %c0_13 = arith.constant 0 : index
    %44 = vector.load %arg1[%c0_12, %c0_13] : memref<2x8xf32, #tpu.memory_space<vmem>>, vector<2x8xf32>
    %cst_14 = arith.constant 1.000000e+00 : f32
    %45 = vector.broadcast %cst_14 : f32 to vector<2x8xf32>
    %46 = arith.subf %45, %44 : vector<2x8xf32>
    %cst_15 = arith.constant -1.000000e+09 : f32
    %47 = vector.broadcast %cst_15 : f32 to vector<2x8xf32>
    %48 = arith.mulf %46, %47 : vector<2x8xf32>
    %49 = vector.shape_cast %48 : vector<2x8xf32> to vector<2x1x8xf32>
    %50 = vector.shape_cast %49 : vector<2x1x8xf32> to vector<2x1x8xf32>
    %51 = vector.broadcast %50 : vector<2x1x8xf32> to vector<2x8x8xf32>
    %c0_16 = arith.constant 0 : index
    %c0_17 = arith.constant 0 : index
    %c0_18 = arith.constant 0 : index
    %52 = vector.load %arg4[%c0_16, %c0_17, %c0_18] : memref<2x32x96xbf16, #tpu.memory_space<vmem>>, vector<1x32x96xbf16>
    %53 = vector.shape_cast %52 : vector<1x32x96xbf16> to vector<32x96xbf16>
    %c0_19 = arith.constant 0 : index
    %c0_20 = arith.constant 0 : index
    %c0_21 = arith.constant 0 : index
    %54 = vector.load %arg5[%c0_19, %c0_20, %c0_21] : memref<2x1x96xf32, #tpu.memory_space<vmem>>, vector<1x1x96xf32>
    %55 = vector.shape_cast %54 : vector<1x1x96xf32> to vector<1x96xf32>
    %c0_22 = arith.constant 0 : index
    %c0_23 = arith.constant 0 : index
    %c0_24 = arith.constant 0 : index
    %56 = vector.load %arg6[%c0_22, %c0_23, %c0_24] : memref<2x32x32xbf16, #tpu.memory_space<vmem>>, vector<1x32x32xbf16>
    %57 = vector.shape_cast %56 : vector<1x32x32xbf16> to vector<32x32xbf16>
    %c0_25 = arith.constant 0 : index
    %c0_26 = arith.constant 0 : index
    %c0_27 = arith.constant 0 : index
    %58 = vector.load %arg7[%c0_25, %c0_26, %c0_27] : memref<2x32x64xbf16, #tpu.memory_space<vmem>>, vector<1x32x64xbf16>
    %59 = vector.shape_cast %58 : vector<1x32x64xbf16> to vector<32x64xbf16>
    %c0_28 = arith.constant 0 : index
    %c0_29 = arith.constant 0 : index
    %c0_30 = arith.constant 0 : index
    %60 = vector.load %arg9[%c0_28, %c0_29, %c0_30] : memref<2x64x32xbf16, #tpu.memory_space<vmem>>, vector<1x64x32xbf16>
    %61 = vector.shape_cast %60 : vector<1x64x32xbf16> to vector<64x32xbf16>
    %c0_31 = arith.constant 0 : index
    %c0_32 = arith.constant 0 : index
    %c0_33 = arith.constant 0 : index
    %62 = vector.load %arg8[%c0_31, %c0_32, %c0_33] : memref<2x1x64xf32, #tpu.memory_space<vmem>>, vector<1x1x64xf32>
    %63 = vector.shape_cast %62 : vector<1x1x64xf32> to vector<1x64xf32>
    %c0_34 = arith.constant 0 : index
    %c0_35 = arith.constant 0 : index
    %c0_36 = arith.constant 0 : index
    %64 = vector.load %arg10[%c0_34, %c0_35, %c0_36] : memref<2x6x32xf32, #tpu.memory_space<vmem>>, vector<1x6x32xf32>
    %65 = vector.shape_cast %64 : vector<1x6x32xf32> to vector<6x32xf32>
    %66 = arith.truncf %43 : vector<16x32xf32> to vector<16x32xbf16>
    %cst_37 = arith.constant dense<0.000000e+00> : vector<16x96xf32>
    %67 = tpu.matmul %66, %53, %cst_37 {dimension_numbers = #tpu.dot_dimension_numbers<[1], [0], [0], [1], [0, 0, 1, 1], [], []>} : vector<16x32xbf16>, vector<32x96xbf16>, vector<16x96xf32> -> vector<16x96xf32>
    %68 = vector.broadcast %55 : vector<1x96xf32> to vector<16x96xf32>
    %69 = arith.addf %67, %68 : vector<16x96xf32>
    %70 = arith.truncf %69 : vector<16x96xf32> to vector<16x96xbf16>
    %71 = vector.shape_cast %70 : vector<16x96xbf16> to vector<2x8x96xbf16>
    %72 = vector.extract_strided_slice %71 {offsets = [0, 0, 0], sizes = [2, 8, 8], strides = [1, 1, 1]} : vector<2x8x96xbf16> to vector<2x8x8xbf16>
    %73 = vector.extract_strided_slice %71 {offsets = [0, 0, 32], sizes = [2, 8, 8], strides = [1, 1, 1]} : vector<2x8x96xbf16> to vector<2x8x8xbf16>
    %74 = vector.extract_strided_slice %71 {offsets = [0, 0, 64], sizes = [2, 8, 8], strides = [1, 1, 1]} : vector<2x8x96xbf16> to vector<2x8x8xbf16>
    "tpu.trace_start"() <{level = 10 : i32, message = "bqd,bkd->bqk"}> : () -> ()
    %cst_38 = arith.constant dense<0.000000e+00> : vector<2x8x8xf32>
    %75 = tpu.matmul %72, %73, %cst_38 {dimension_numbers = #tpu.dot_dimension_numbers<[2], [2], [1], [1], [0, 0, 0, 1, 1, 1], [0], [0]>} : vector<2x8x8xbf16>, vector<2x8x8xbf16>, vector<2x8x8xf32> -> vector<2x8x8xf32>
    "tpu.trace_stop"() : () -> ()
    %76 = arith.addf %75, %51 : vector<2x8x8xf32>
    %cst_39 = arith.constant dense<0xFF800000> : vector<2x8xf32>
    %77 = vector.multi_reduction <maximumf>, %76, %cst_39 [2] : vector<2x8x8xf32> to vector<2x8xf32>
    %78 = vector.shape_cast %77 : vector<2x8xf32> to vector<2x8x1xf32>
    %79 = vector.broadcast %78 : vector<2x8x1xf32> to vector<2x8x8xf32>
    %80 = arith.subf %76, %79 : vector<2x8x8xf32>
    %81 = math.exp %80 : vector<2x8x8xf32>
    %cst_40 = arith.constant dense<0.000000e+00> : vector<2x8xf32>
    %82 = vector.multi_reduction <add>, %81, %cst_40 [2] : vector<2x8x8xf32> to vector<2x8xf32>
    %83 = vector.shape_cast %82 : vector<2x8xf32> to vector<2x8x1xf32>
    %84 = tpu.reciprocal %83 {approx = true} : vector<2x8x1xf32> -> vector<2x8x1xf32>
    %85 = vector.broadcast %84 : vector<2x8x1xf32> to vector<2x8x8xf32>
    %86 = arith.mulf %81, %85 : vector<2x8x8xf32>
    %87 = arith.truncf %86 : vector<2x8x8xf32> to vector<2x8x8xbf16>
    "tpu.trace_start"() <{level = 10 : i32, message = "bqk,bkd->bqd"}> : () -> ()
    %cst_41 = arith.constant dense<0.000000e+00> : vector<2x8x8xf32>
    %88 = tpu.matmul %87, %74, %cst_41 {dimension_numbers = #tpu.dot_dimension_numbers<[2], [1], [1], [2], [0, 0, 0, 1, 1, 2], [0], [0]>} : vector<2x8x8xbf16>, vector<2x8x8xbf16>, vector<2x8x8xf32> -> vector<2x8x8xf32>
    "tpu.trace_stop"() : () -> ()
    %89 = vector.shape_cast %88 : vector<2x8x8xf32> to vector<16x8xf32>
    %90 = vector.extract_strided_slice %71 {offsets = [0, 0, 8], sizes = [2, 8, 8], strides = [1, 1, 1]} : vector<2x8x96xbf16> to vector<2x8x8xbf16>
    %91 = vector.extract_strided_slice %71 {offsets = [0, 0, 40], sizes = [2, 8, 8], strides = [1, 1, 1]} : vector<2x8x96xbf16> to vector<2x8x8xbf16>
    %92 = vector.extract_strided_slice %71 {offsets = [0, 0, 72], sizes = [2, 8, 8], strides = [1, 1, 1]} : vector<2x8x96xbf16> to vector<2x8x8xbf16>
    "tpu.trace_start"() <{level = 10 : i32, message = "bqd,bkd->bqk"}> : () -> ()
    %cst_42 = arith.constant dense<0.000000e+00> : vector<2x8x8xf32>
    %93 = tpu.matmul %90, %91, %cst_42 {dimension_numbers = #tpu.dot_dimension_numbers<[2], [2], [1], [1], [0, 0, 0, 1, 1, 1], [0], [0]>} : vector<2x8x8xbf16>, vector<2x8x8xbf16>, vector<2x8x8xf32> -> vector<2x8x8xf32>
    "tpu.trace_stop"() : () -> ()
    %94 = arith.addf %93, %51 : vector<2x8x8xf32>
    %cst_43 = arith.constant dense<0xFF800000> : vector<2x8xf32>
    %95 = vector.multi_reduction <maximumf>, %94, %cst_43 [2] : vector<2x8x8xf32> to vector<2x8xf32>
    %96 = vector.shape_cast %95 : vector<2x8xf32> to vector<2x8x1xf32>
    %97 = vector.broadcast %96 : vector<2x8x1xf32> to vector<2x8x8xf32>
    %98 = arith.subf %94, %97 : vector<2x8x8xf32>
    %99 = math.exp %98 : vector<2x8x8xf32>
    %cst_44 = arith.constant dense<0.000000e+00> : vector<2x8xf32>
    %100 = vector.multi_reduction <add>, %99, %cst_44 [2] : vector<2x8x8xf32> to vector<2x8xf32>
    %101 = vector.shape_cast %100 : vector<2x8xf32> to vector<2x8x1xf32>
    %102 = tpu.reciprocal %101 {approx = true} : vector<2x8x1xf32> -> vector<2x8x1xf32>
    %103 = vector.broadcast %102 : vector<2x8x1xf32> to vector<2x8x8xf32>
    %104 = arith.mulf %99, %103 : vector<2x8x8xf32>
    %105 = arith.truncf %104 : vector<2x8x8xf32> to vector<2x8x8xbf16>
    "tpu.trace_start"() <{level = 10 : i32, message = "bqk,bkd->bqd"}> : () -> ()
    %cst_45 = arith.constant dense<0.000000e+00> : vector<2x8x8xf32>
    %106 = tpu.matmul %105, %92, %cst_45 {dimension_numbers = #tpu.dot_dimension_numbers<[2], [1], [1], [2], [0, 0, 0, 1, 1, 2], [0], [0]>} : vector<2x8x8xbf16>, vector<2x8x8xbf16>, vector<2x8x8xf32> -> vector<2x8x8xf32>
    "tpu.trace_stop"() : () -> ()
    %107 = vector.shape_cast %106 : vector<2x8x8xf32> to vector<16x8xf32>
    %108 = vector.extract_strided_slice %71 {offsets = [0, 0, 16], sizes = [2, 8, 8], strides = [1, 1, 1]} : vector<2x8x96xbf16> to vector<2x8x8xbf16>
    %109 = vector.extract_strided_slice %71 {offsets = [0, 0, 48], sizes = [2, 8, 8], strides = [1, 1, 1]} : vector<2x8x96xbf16> to vector<2x8x8xbf16>
    %110 = vector.extract_strided_slice %71 {offsets = [0, 0, 80], sizes = [2, 8, 8], strides = [1, 1, 1]} : vector<2x8x96xbf16> to vector<2x8x8xbf16>
    "tpu.trace_start"() <{level = 10 : i32, message = "bqd,bkd->bqk"}> : () -> ()
    %cst_46 = arith.constant dense<0.000000e+00> : vector<2x8x8xf32>
    %111 = tpu.matmul %108, %109, %cst_46 {dimension_numbers = #tpu.dot_dimension_numbers<[2], [2], [1], [1], [0, 0, 0, 1, 1, 1], [0], [0]>} : vector<2x8x8xbf16>, vector<2x8x8xbf16>, vector<2x8x8xf32> -> vector<2x8x8xf32>
    "tpu.trace_stop"() : () -> ()
    %112 = arith.addf %111, %51 : vector<2x8x8xf32>
    %cst_47 = arith.constant dense<0xFF800000> : vector<2x8xf32>
    %113 = vector.multi_reduction <maximumf>, %112, %cst_47 [2] : vector<2x8x8xf32> to vector<2x8xf32>
    %114 = vector.shape_cast %113 : vector<2x8xf32> to vector<2x8x1xf32>
    %115 = vector.broadcast %114 : vector<2x8x1xf32> to vector<2x8x8xf32>
    %116 = arith.subf %112, %115 : vector<2x8x8xf32>
    %117 = math.exp %116 : vector<2x8x8xf32>
    %cst_48 = arith.constant dense<0.000000e+00> : vector<2x8xf32>
    %118 = vector.multi_reduction <add>, %117, %cst_48 [2] : vector<2x8x8xf32> to vector<2x8xf32>
    %119 = vector.shape_cast %118 : vector<2x8xf32> to vector<2x8x1xf32>
    %120 = tpu.reciprocal %119 {approx = true} : vector<2x8x1xf32> -> vector<2x8x1xf32>
    %121 = vector.broadcast %120 : vector<2x8x1xf32> to vector<2x8x8xf32>
    %122 = arith.mulf %117, %121 : vector<2x8x8xf32>
    %123 = arith.truncf %122 : vector<2x8x8xf32> to vector<2x8x8xbf16>
    "tpu.trace_start"() <{level = 10 : i32, message = "bqk,bkd->bqd"}> : () -> ()
    %cst_49 = arith.constant dense<0.000000e+00> : vector<2x8x8xf32>
    %124 = tpu.matmul %123, %110, %cst_49 {dimension_numbers = #tpu.dot_dimension_numbers<[2], [1], [1], [2], [0, 0, 0, 1, 1, 2], [0], [0]>} : vector<2x8x8xbf16>, vector<2x8x8xbf16>, vector<2x8x8xf32> -> vector<2x8x8xf32>
    "tpu.trace_stop"() : () -> ()
    %125 = vector.shape_cast %124 : vector<2x8x8xf32> to vector<16x8xf32>
    %126 = vector.extract_strided_slice %71 {offsets = [0, 0, 24], sizes = [2, 8, 8], strides = [1, 1, 1]} : vector<2x8x96xbf16> to vector<2x8x8xbf16>
    %127 = vector.extract_strided_slice %71 {offsets = [0, 0, 56], sizes = [2, 8, 8], strides = [1, 1, 1]} : vector<2x8x96xbf16> to vector<2x8x8xbf16>
    %128 = vector.extract_strided_slice %71 {offsets = [0, 0, 88], sizes = [2, 8, 8], strides = [1, 1, 1]} : vector<2x8x96xbf16> to vector<2x8x8xbf16>
    "tpu.trace_start"() <{level = 10 : i32, message = "bqd,bkd->bqk"}> : () -> ()
    %cst_50 = arith.constant dense<0.000000e+00> : vector<2x8x8xf32>
    %129 = tpu.matmul %126, %127, %cst_50 {dimension_numbers = #tpu.dot_dimension_numbers<[2], [2], [1], [1], [0, 0, 0, 1, 1, 1], [0], [0]>} : vector<2x8x8xbf16>, vector<2x8x8xbf16>, vector<2x8x8xf32> -> vector<2x8x8xf32>
    "tpu.trace_stop"() : () -> ()
    %130 = arith.addf %129, %51 : vector<2x8x8xf32>
    %cst_51 = arith.constant dense<0xFF800000> : vector<2x8xf32>
    %131 = vector.multi_reduction <maximumf>, %130, %cst_51 [2] : vector<2x8x8xf32> to vector<2x8xf32>
    %132 = vector.shape_cast %131 : vector<2x8xf32> to vector<2x8x1xf32>
    %133 = vector.broadcast %132 : vector<2x8x1xf32> to vector<2x8x8xf32>
    %134 = arith.subf %130, %133 : vector<2x8x8xf32>
    %135 = math.exp %134 : vector<2x8x8xf32>
    %cst_52 = arith.constant dense<0.000000e+00> : vector<2x8xf32>
    %136 = vector.multi_reduction <add>, %135, %cst_52 [2] : vector<2x8x8xf32> to vector<2x8xf32>
    %137 = vector.shape_cast %136 : vector<2x8xf32> to vector<2x8x1xf32>
    %138 = tpu.reciprocal %137 {approx = true} : vector<2x8x1xf32> -> vector<2x8x1xf32>
    %139 = vector.broadcast %138 : vector<2x8x1xf32> to vector<2x8x8xf32>
    %140 = arith.mulf %135, %139 : vector<2x8x8xf32>
    %141 = arith.truncf %140 : vector<2x8x8xf32> to vector<2x8x8xbf16>
    "tpu.trace_start"() <{level = 10 : i32, message = "bqk,bkd->bqd"}> : () -> ()
    %cst_53 = arith.constant dense<0.000000e+00> : vector<2x8x8xf32>
    %142 = tpu.matmul %141, %128, %cst_53 {dimension_numbers = #tpu.dot_dimension_numbers<[2], [1], [1], [2], [0, 0, 0, 1, 1, 2], [0], [0]>} : vector<2x8x8xbf16>, vector<2x8x8xbf16>, vector<2x8x8xf32> -> vector<2x8x8xf32>
    "tpu.trace_stop"() : () -> ()
    %143 = vector.shape_cast %142 : vector<2x8x8xf32> to vector<16x8xf32>
    %144 = tpu.concatenate %89, %107, %125, %143 in 1 : vector<16x8xf32>, vector<16x8xf32>, vector<16x8xf32>, vector<16x8xf32> -> vector<16x32xf32>
    %145 = arith.truncf %144 : vector<16x32xf32> to vector<16x32xbf16>
    %cst_54 = arith.constant dense<0.000000e+00> : vector<16x32xf32>
    %146 = tpu.matmul %145, %57, %cst_54 {dimension_numbers = #tpu.dot_dimension_numbers<[1], [0], [0], [1], [0, 0, 1, 1], [], []>} : vector<16x32xbf16>, vector<32x32xbf16>, vector<16x32xf32> -> vector<16x32xf32>
    %147 = vector.extract_strided_slice %65 {offsets = [0, 0], sizes = [1, 32], strides = [1, 1]} : vector<6x32xf32> to vector<1x32xf32>
    %148 = vector.broadcast %147 : vector<1x32xf32> to vector<16x32xf32>
    %149 = arith.addf %146, %148 : vector<16x32xf32>
    %150 = arith.addf %43, %149 : vector<16x32xf32>
    %151 = vector.extract_strided_slice %65 {offsets = [1, 0], sizes = [1, 32], strides = [1, 1]} : vector<6x32xf32> to vector<1x32xf32>
    %152 = vector.extract_strided_slice %65 {offsets = [2, 0], sizes = [1, 32], strides = [1, 1]} : vector<6x32xf32> to vector<1x32xf32>
    %cst_55 = arith.constant dense<0.000000e+00> : vector<16xf32>
    %153 = vector.multi_reduction <add>, %150, %cst_55 [1] : vector<16x32xf32> to vector<16xf32>
    %154 = vector.shape_cast %153 : vector<16xf32> to vector<16x1xf32>
    %cst_56 = arith.constant 3.200000e+01 : f32
    %155 = vector.broadcast %cst_56 : f32 to vector<16x1xf32>
    %156 = arith.divf %154, %155 : vector<16x1xf32>
    %157 = vector.broadcast %156 : vector<16x1xf32> to vector<16x32xf32>
    %158 = arith.subf %150, %157 : vector<16x32xf32>
    %159 = arith.mulf %158, %158 : vector<16x32xf32>
    %cst_57 = arith.constant dense<0.000000e+00> : vector<16xf32>
    %160 = vector.multi_reduction <add>, %159, %cst_57 [1] : vector<16x32xf32> to vector<16xf32>
    %161 = vector.shape_cast %160 : vector<16xf32> to vector<16x1xf32>
    %cst_58 = arith.constant 3.200000e+01 : f32
    %162 = vector.broadcast %cst_58 : f32 to vector<16x1xf32>
    %163 = arith.divf %161, %162 : vector<16x1xf32>
    %164 = vector.broadcast %156 : vector<16x1xf32> to vector<16x32xf32>
    %165 = arith.subf %150, %164 : vector<16x32xf32>
    %cst_59 = arith.constant 9.99999996E-13 : f32
    %166 = vector.broadcast %cst_59 : f32 to vector<16x1xf32>
    %167 = arith.addf %163, %166 : vector<16x1xf32>
    %168 = math.rsqrt %167 : vector<16x1xf32>
    %169 = vector.broadcast %168 : vector<16x1xf32> to vector<16x32xf32>
    %170 = arith.mulf %165, %169 : vector<16x32xf32>
    %171 = vector.broadcast %151 : vector<1x32xf32> to vector<16x32xf32>
    %172 = arith.mulf %170, %171 : vector<16x32xf32>
    %173 = vector.broadcast %152 : vector<1x32xf32> to vector<16x32xf32>
    %174 = arith.addf %172, %173 : vector<16x32xf32>
    %175 = arith.truncf %174 : vector<16x32xf32> to vector<16x32xbf16>
    %cst_60 = arith.constant dense<0.000000e+00> : vector<16x64xf32>
    %176 = tpu.matmul %175, %59, %cst_60 {dimension_numbers = #tpu.dot_dimension_numbers<[1], [0], [0], [1], [0, 0, 1, 1], [], []>} : vector<16x32xbf16>, vector<32x64xbf16>, vector<16x64xf32> -> vector<16x64xf32>
    %177 = vector.broadcast %63 : vector<1x64xf32> to vector<16x64xf32>
    %178 = arith.addf %176, %177 : vector<16x64xf32>
    %cst_61 = arith.constant 5.000000e-01 : f32
    %179 = vector.broadcast %cst_61 : f32 to vector<16x64xf32>
    %180 = arith.mulf %179, %178 : vector<16x64xf32>
    %cst_62 = arith.constant 4.471500e-02 : f32
    %181 = vector.broadcast %cst_62 : f32 to vector<16x64xf32>
    %182 = arith.mulf %181, %178 : vector<16x64xf32>
    %183 = arith.mulf %182, %178 : vector<16x64xf32>
    %184 = arith.mulf %183, %178 : vector<16x64xf32>
    %185 = arith.addf %178, %184 : vector<16x64xf32>
    %cst_63 = arith.constant 0.797884583 : f32
    %186 = vector.broadcast %cst_63 : f32 to vector<16x64xf32>
    %187 = arith.mulf %186, %185 : vector<16x64xf32>
    %188 = math.tanh %187 : vector<16x64xf32>
    %cst_64 = arith.constant 1.000000e+00 : f32
    %189 = vector.broadcast %cst_64 : f32 to vector<16x64xf32>
    %190 = arith.addf %189, %188 : vector<16x64xf32>
    %191 = arith.mulf %180, %190 : vector<16x64xf32>
    %192 = arith.truncf %191 : vector<16x64xf32> to vector<16x64xbf16>
    %cst_65 = arith.constant dense<0.000000e+00> : vector<16x32xf32>
    %193 = tpu.matmul %192, %61, %cst_65 {dimension_numbers = #tpu.dot_dimension_numbers<[1], [0], [0], [1], [0, 0, 1, 1], [], []>} : vector<16x64xbf16>, vector<64x32xbf16>, vector<16x32xf32> -> vector<16x32xf32>
    %194 = vector.extract_strided_slice %65 {offsets = [3, 0], sizes = [1, 32], strides = [1, 1]} : vector<6x32xf32> to vector<1x32xf32>
    %195 = vector.broadcast %194 : vector<1x32xf32> to vector<16x32xf32>
    %196 = arith.addf %193, %195 : vector<16x32xf32>
    %197 = arith.addf %174, %196 : vector<16x32xf32>
    %198 = vector.extract_strided_slice %65 {offsets = [4, 0], sizes = [1, 32], strides = [1, 1]} : vector<6x32xf32> to vector<1x32xf32>
    %199 = vector.extract_strided_slice %65 {offsets = [5, 0], sizes = [1, 32], strides = [1, 1]} : vector<6x32xf32> to vector<1x32xf32>
    %cst_66 = arith.constant dense<0.000000e+00> : vector<16xf32>
    %200 = vector.multi_reduction <add>, %197, %cst_66 [1] : vector<16x32xf32> to vector<16xf32>
    %201 = vector.shape_cast %200 : vector<16xf32> to vector<16x1xf32>
    %cst_67 = arith.constant 3.200000e+01 : f32
    %202 = vector.broadcast %cst_67 : f32 to vector<16x1xf32>
    %203 = arith.divf %201, %202 : vector<16x1xf32>
    %204 = vector.broadcast %203 : vector<16x1xf32> to vector<16x32xf32>
    %205 = arith.subf %197, %204 : vector<16x32xf32>
    %206 = arith.mulf %205, %205 : vector<16x32xf32>
    %cst_68 = arith.constant dense<0.000000e+00> : vector<16xf32>
    %207 = vector.multi_reduction <add>, %206, %cst_68 [1] : vector<16x32xf32> to vector<16xf32>
    %208 = vector.shape_cast %207 : vector<16xf32> to vector<16x1xf32>
    %cst_69 = arith.constant 3.200000e+01 : f32
    %209 = vector.broadcast %cst_69 : f32 to vector<16x1xf32>
    %210 = arith.divf %208, %209 : vector<16x1xf32>
    %211 = vector.broadcast %203 : vector<16x1xf32> to vector<16x32xf32>
    %212 = arith.subf %197, %211 : vector<16x32xf32>
    %cst_70 = arith.constant 9.99999996E-13 : f32
    %213 = vector.broadcast %cst_70 : f32 to vector<16x1xf32>
    %214 = arith.addf %210, %213 : vector<16x1xf32>
    %215 = math.rsqrt %214 : vector<16x1xf32>
    %216 = vector.broadcast %215 : vector<16x1xf32> to vector<16x32xf32>
    %217 = arith.mulf %212, %216 : vector<16x32xf32>
    %218 = vector.broadcast %198 : vector<1x32xf32> to vector<16x32xf32>
    %219 = arith.mulf %217, %218 : vector<16x32xf32>
    %220 = vector.broadcast %199 : vector<1x32xf32> to vector<16x32xf32>
    %221 = arith.addf %219, %220 : vector<16x32xf32>
    %c1 = arith.constant 1 : index
    %c0_71 = arith.constant 0 : index
    %c0_72 = arith.constant 0 : index
    %222 = vector.load %arg4[%c1, %c0_71, %c0_72] : memref<2x32x96xbf16, #tpu.memory_space<vmem>>, vector<1x32x96xbf16>
    %223 = vector.shape_cast %222 : vector<1x32x96xbf16> to vector<32x96xbf16>
    %c1_73 = arith.constant 1 : index
    %c0_74 = arith.constant 0 : index
    %c0_75 = arith.constant 0 : index
    %224 = vector.load %arg5[%c1_73, %c0_74, %c0_75] : memref<2x1x96xf32, #tpu.memory_space<vmem>>, vector<1x1x96xf32>
    %225 = vector.shape_cast %224 : vector<1x1x96xf32> to vector<1x96xf32>
    %c1_76 = arith.constant 1 : index
    %c0_77 = arith.constant 0 : index
    %c0_78 = arith.constant 0 : index
    %226 = vector.load %arg6[%c1_76, %c0_77, %c0_78] : memref<2x32x32xbf16, #tpu.memory_space<vmem>>, vector<1x32x32xbf16>
    %227 = vector.shape_cast %226 : vector<1x32x32xbf16> to vector<32x32xbf16>
    %c1_79 = arith.constant 1 : index
    %c0_80 = arith.constant 0 : index
    %c0_81 = arith.constant 0 : index
    %228 = vector.load %arg7[%c1_79, %c0_80, %c0_81] : memref<2x32x64xbf16, #tpu.memory_space<vmem>>, vector<1x32x64xbf16>
    %229 = vector.shape_cast %228 : vector<1x32x64xbf16> to vector<32x64xbf16>
    %c1_82 = arith.constant 1 : index
    %c0_83 = arith.constant 0 : index
    %c0_84 = arith.constant 0 : index
    %230 = vector.load %arg9[%c1_82, %c0_83, %c0_84] : memref<2x64x32xbf16, #tpu.memory_space<vmem>>, vector<1x64x32xbf16>
    %231 = vector.shape_cast %230 : vector<1x64x32xbf16> to vector<64x32xbf16>
    %c1_85 = arith.constant 1 : index
    %c0_86 = arith.constant 0 : index
    %c0_87 = arith.constant 0 : index
    %232 = vector.load %arg8[%c1_85, %c0_86, %c0_87] : memref<2x1x64xf32, #tpu.memory_space<vmem>>, vector<1x1x64xf32>
    %233 = vector.shape_cast %232 : vector<1x1x64xf32> to vector<1x64xf32>
    %c1_88 = arith.constant 1 : index
    %c0_89 = arith.constant 0 : index
    %c0_90 = arith.constant 0 : index
    %234 = vector.load %arg10[%c1_88, %c0_89, %c0_90] : memref<2x6x32xf32, #tpu.memory_space<vmem>>, vector<1x6x32xf32>
    %235 = vector.shape_cast %234 : vector<1x6x32xf32> to vector<6x32xf32>
    %236 = arith.truncf %221 : vector<16x32xf32> to vector<16x32xbf16>
    %cst_91 = arith.constant dense<0.000000e+00> : vector<16x96xf32>
    %237 = tpu.matmul %236, %223, %cst_91 {dimension_numbers = #tpu.dot_dimension_numbers<[1], [0], [0], [1], [0, 0, 1, 1], [], []>} : vector<16x32xbf16>, vector<32x96xbf16>, vector<16x96xf32> -> vector<16x96xf32>
    %238 = vector.broadcast %225 : vector<1x96xf32> to vector<16x96xf32>
    %239 = arith.addf %237, %238 : vector<16x96xf32>
    %240 = arith.truncf %239 : vector<16x96xf32> to vector<16x96xbf16>
    %241 = vector.shape_cast %240 : vector<16x96xbf16> to vector<2x8x96xbf16>
    %242 = vector.extract_strided_slice %241 {offsets = [0, 0, 0], sizes = [2, 8, 8], strides = [1, 1, 1]} : vector<2x8x96xbf16> to vector<2x8x8xbf16>
    %243 = vector.extract_strided_slice %241 {offsets = [0, 0, 32], sizes = [2, 8, 8], strides = [1, 1, 1]} : vector<2x8x96xbf16> to vector<2x8x8xbf16>
    %244 = vector.extract_strided_slice %241 {offsets = [0, 0, 64], sizes = [2, 8, 8], strides = [1, 1, 1]} : vector<2x8x96xbf16> to vector<2x8x8xbf16>
    "tpu.trace_start"() <{level = 10 : i32, message = "bqd,bkd->bqk"}> : () -> ()
    %cst_92 = arith.constant dense<0.000000e+00> : vector<2x8x8xf32>
    %245 = tpu.matmul %242, %243, %cst_92 {dimension_numbers = #tpu.dot_dimension_numbers<[2], [2], [1], [1], [0, 0, 0, 1, 1, 1], [0], [0]>} : vector<2x8x8xbf16>, vector<2x8x8xbf16>, vector<2x8x8xf32> -> vector<2x8x8xf32>
    "tpu.trace_stop"() : () -> ()
    %246 = arith.addf %245, %51 : vector<2x8x8xf32>
    %cst_93 = arith.constant dense<0xFF800000> : vector<2x8xf32>
    %247 = vector.multi_reduction <maximumf>, %246, %cst_93 [2] : vector<2x8x8xf32> to vector<2x8xf32>
    %248 = vector.shape_cast %247 : vector<2x8xf32> to vector<2x8x1xf32>
    %249 = vector.broadcast %248 : vector<2x8x1xf32> to vector<2x8x8xf32>
    %250 = arith.subf %246, %249 : vector<2x8x8xf32>
    %251 = math.exp %250 : vector<2x8x8xf32>
    %cst_94 = arith.constant dense<0.000000e+00> : vector<2x8xf32>
    %252 = vector.multi_reduction <add>, %251, %cst_94 [2] : vector<2x8x8xf32> to vector<2x8xf32>
    %253 = vector.shape_cast %252 : vector<2x8xf32> to vector<2x8x1xf32>
    %254 = tpu.reciprocal %253 {approx = true} : vector<2x8x1xf32> -> vector<2x8x1xf32>
    %255 = vector.broadcast %254 : vector<2x8x1xf32> to vector<2x8x8xf32>
    %256 = arith.mulf %251, %255 : vector<2x8x8xf32>
    %257 = arith.truncf %256 : vector<2x8x8xf32> to vector<2x8x8xbf16>
    "tpu.trace_start"() <{level = 10 : i32, message = "bqk,bkd->bqd"}> : () -> ()
    %cst_95 = arith.constant dense<0.000000e+00> : vector<2x8x8xf32>
    %258 = tpu.matmul %257, %244, %cst_95 {dimension_numbers = #tpu.dot_dimension_numbers<[2], [1], [1], [2], [0, 0, 0, 1, 1, 2], [0], [0]>} : vector<2x8x8xbf16>, vector<2x8x8xbf16>, vector<2x8x8xf32> -> vector<2x8x8xf32>
    "tpu.trace_stop"() : () -> ()
    %259 = vector.shape_cast %258 : vector<2x8x8xf32> to vector<16x8xf32>
    %260 = vector.extract_strided_slice %241 {offsets = [0, 0, 8], sizes = [2, 8, 8], strides = [1, 1, 1]} : vector<2x8x96xbf16> to vector<2x8x8xbf16>
    %261 = vector.extract_strided_slice %241 {offsets = [0, 0, 40], sizes = [2, 8, 8], strides = [1, 1, 1]} : vector<2x8x96xbf16> to vector<2x8x8xbf16>
    %262 = vector.extract_strided_slice %241 {offsets = [0, 0, 72], sizes = [2, 8, 8], strides = [1, 1, 1]} : vector<2x8x96xbf16> to vector<2x8x8xbf16>
    "tpu.trace_start"() <{level = 10 : i32, message = "bqd,bkd->bqk"}> : () -> ()
    %cst_96 = arith.constant dense<0.000000e+00> : vector<2x8x8xf32>
    %263 = tpu.matmul %260, %261, %cst_96 {dimension_numbers = #tpu.dot_dimension_numbers<[2], [2], [1], [1], [0, 0, 0, 1, 1, 1], [0], [0]>} : vector<2x8x8xbf16>, vector<2x8x8xbf16>, vector<2x8x8xf32> -> vector<2x8x8xf32>
    "tpu.trace_stop"() : () -> ()
    %264 = arith.addf %263, %51 : vector<2x8x8xf32>
    %cst_97 = arith.constant dense<0xFF800000> : vector<2x8xf32>
    %265 = vector.multi_reduction <maximumf>, %264, %cst_97 [2] : vector<2x8x8xf32> to vector<2x8xf32>
    %266 = vector.shape_cast %265 : vector<2x8xf32> to vector<2x8x1xf32>
    %267 = vector.broadcast %266 : vector<2x8x1xf32> to vector<2x8x8xf32>
    %268 = arith.subf %264, %267 : vector<2x8x8xf32>
    %269 = math.exp %268 : vector<2x8x8xf32>
    %cst_98 = arith.constant dense<0.000000e+00> : vector<2x8xf32>
    %270 = vector.multi_reduction <add>, %269, %cst_98 [2] : vector<2x8x8xf32> to vector<2x8xf32>
    %271 = vector.shape_cast %270 : vector<2x8xf32> to vector<2x8x1xf32>
    %272 = tpu.reciprocal %271 {approx = true} : vector<2x8x1xf32> -> vector<2x8x1xf32>
    %273 = vector.broadcast %272 : vector<2x8x1xf32> to vector<2x8x8xf32>
    %274 = arith.mulf %269, %273 : vector<2x8x8xf32>
    %275 = arith.truncf %274 : vector<2x8x8xf32> to vector<2x8x8xbf16>
    "tpu.trace_start"() <{level = 10 : i32, message = "bqk,bkd->bqd"}> : () -> ()
    %cst_99 = arith.constant dense<0.000000e+00> : vector<2x8x8xf32>
    %276 = tpu.matmul %275, %262, %cst_99 {dimension_numbers = #tpu.dot_dimension_numbers<[2], [1], [1], [2], [0, 0, 0, 1, 1, 2], [0], [0]>} : vector<2x8x8xbf16>, vector<2x8x8xbf16>, vector<2x8x8xf32> -> vector<2x8x8xf32>
    "tpu.trace_stop"() : () -> ()
    %277 = vector.shape_cast %276 : vector<2x8x8xf32> to vector<16x8xf32>
    %278 = vector.extract_strided_slice %241 {offsets = [0, 0, 16], sizes = [2, 8, 8], strides = [1, 1, 1]} : vector<2x8x96xbf16> to vector<2x8x8xbf16>
    %279 = vector.extract_strided_slice %241 {offsets = [0, 0, 48], sizes = [2, 8, 8], strides = [1, 1, 1]} : vector<2x8x96xbf16> to vector<2x8x8xbf16>
    %280 = vector.extract_strided_slice %241 {offsets = [0, 0, 80], sizes = [2, 8, 8], strides = [1, 1, 1]} : vector<2x8x96xbf16> to vector<2x8x8xbf16>
    "tpu.trace_start"() <{level = 10 : i32, message = "bqd,bkd->bqk"}> : () -> ()
    %cst_100 = arith.constant dense<0.000000e+00> : vector<2x8x8xf32>
    %281 = tpu.matmul %278, %279, %cst_100 {dimension_numbers = #tpu.dot_dimension_numbers<[2], [2], [1], [1], [0, 0, 0, 1, 1, 1], [0], [0]>} : vector<2x8x8xbf16>, vector<2x8x8xbf16>, vector<2x8x8xf32> -> vector<2x8x8xf32>
    "tpu.trace_stop"() : () -> ()
    %282 = arith.addf %281, %51 : vector<2x8x8xf32>
    %cst_101 = arith.constant dense<0xFF800000> : vector<2x8xf32>
    %283 = vector.multi_reduction <maximumf>, %282, %cst_101 [2] : vector<2x8x8xf32> to vector<2x8xf32>
    %284 = vector.shape_cast %283 : vector<2x8xf32> to vector<2x8x1xf32>
    %285 = vector.broadcast %284 : vector<2x8x1xf32> to vector<2x8x8xf32>
    %286 = arith.subf %282, %285 : vector<2x8x8xf32>
    %287 = math.exp %286 : vector<2x8x8xf32>
    %cst_102 = arith.constant dense<0.000000e+00> : vector<2x8xf32>
    %288 = vector.multi_reduction <add>, %287, %cst_102 [2] : vector<2x8x8xf32> to vector<2x8xf32>
    %289 = vector.shape_cast %288 : vector<2x8xf32> to vector<2x8x1xf32>
    %290 = tpu.reciprocal %289 {approx = true} : vector<2x8x1xf32> -> vector<2x8x1xf32>
    %291 = vector.broadcast %290 : vector<2x8x1xf32> to vector<2x8x8xf32>
    %292 = arith.mulf %287, %291 : vector<2x8x8xf32>
    %293 = arith.truncf %292 : vector<2x8x8xf32> to vector<2x8x8xbf16>
    "tpu.trace_start"() <{level = 10 : i32, message = "bqk,bkd->bqd"}> : () -> ()
    %cst_103 = arith.constant dense<0.000000e+00> : vector<2x8x8xf32>
    %294 = tpu.matmul %293, %280, %cst_103 {dimension_numbers = #tpu.dot_dimension_numbers<[2], [1], [1], [2], [0, 0, 0, 1, 1, 2], [0], [0]>} : vector<2x8x8xbf16>, vector<2x8x8xbf16>, vector<2x8x8xf32> -> vector<2x8x8xf32>
    "tpu.trace_stop"() : () -> ()
    %295 = vector.shape_cast %294 : vector<2x8x8xf32> to vector<16x8xf32>
    %296 = vector.extract_strided_slice %241 {offsets = [0, 0, 24], sizes = [2, 8, 8], strides = [1, 1, 1]} : vector<2x8x96xbf16> to vector<2x8x8xbf16>
    %297 = vector.extract_strided_slice %241 {offsets = [0, 0, 56], sizes = [2, 8, 8], strides = [1, 1, 1]} : vector<2x8x96xbf16> to vector<2x8x8xbf16>
    %298 = vector.extract_strided_slice %241 {offsets = [0, 0, 88], sizes = [2, 8, 8], strides = [1, 1, 1]} : vector<2x8x96xbf16> to vector<2x8x8xbf16>
    "tpu.trace_start"() <{level = 10 : i32, message = "bqd,bkd->bqk"}> : () -> ()
    %cst_104 = arith.constant dense<0.000000e+00> : vector<2x8x8xf32>
    %299 = tpu.matmul %296, %297, %cst_104 {dimension_numbers = #tpu.dot_dimension_numbers<[2], [2], [1], [1], [0, 0, 0, 1, 1, 1], [0], [0]>} : vector<2x8x8xbf16>, vector<2x8x8xbf16>, vector<2x8x8xf32> -> vector<2x8x8xf32>
    "tpu.trace_stop"() : () -> ()
    %300 = arith.addf %299, %51 : vector<2x8x8xf32>
    %cst_105 = arith.constant dense<0xFF800000> : vector<2x8xf32>
    %301 = vector.multi_reduction <maximumf>, %300, %cst_105 [2] : vector<2x8x8xf32> to vector<2x8xf32>
    %302 = vector.shape_cast %301 : vector<2x8xf32> to vector<2x8x1xf32>
    %303 = vector.broadcast %302 : vector<2x8x1xf32> to vector<2x8x8xf32>
    %304 = arith.subf %300, %303 : vector<2x8x8xf32>
    %305 = math.exp %304 : vector<2x8x8xf32>
    %cst_106 = arith.constant dense<0.000000e+00> : vector<2x8xf32>
    %306 = vector.multi_reduction <add>, %305, %cst_106 [2] : vector<2x8x8xf32> to vector<2x8xf32>
    %307 = vector.shape_cast %306 : vector<2x8xf32> to vector<2x8x1xf32>
    %308 = tpu.reciprocal %307 {approx = true} : vector<2x8x1xf32> -> vector<2x8x1xf32>
    %309 = vector.broadcast %308 : vector<2x8x1xf32> to vector<2x8x8xf32>
    %310 = arith.mulf %305, %309 : vector<2x8x8xf32>
    %311 = arith.truncf %310 : vector<2x8x8xf32> to vector<2x8x8xbf16>
    "tpu.trace_start"() <{level = 10 : i32, message = "bqk,bkd->bqd"}> : () -> ()
    %cst_107 = arith.constant dense<0.000000e+00> : vector<2x8x8xf32>
    %312 = tpu.matmul %311, %298, %cst_107 {dimension_numbers = #tpu.dot_dimension_numbers<[2], [1], [1], [2], [0, 0, 0, 1, 1, 2], [0], [0]>} : vector<2x8x8xbf16>, vector<2x8x8xbf16>, vector<2x8x8xf32> -> vector<2x8x8xf32>
    "tpu.trace_stop"() : () -> ()
    %313 = vector.shape_cast %312 : vector<2x8x8xf32> to vector<16x8xf32>
    %314 = tpu.concatenate %259, %277, %295, %313 in 1 : vector<16x8xf32>, vector<16x8xf32>, vector<16x8xf32>, vector<16x8xf32> -> vector<16x32xf32>
    %315 = arith.truncf %314 : vector<16x32xf32> to vector<16x32xbf16>
    %cst_108 = arith.constant dense<0.000000e+00> : vector<16x32xf32>
    %316 = tpu.matmul %315, %227, %cst_108 {dimension_numbers = #tpu.dot_dimension_numbers<[1], [0], [0], [1], [0, 0, 1, 1], [], []>} : vector<16x32xbf16>, vector<32x32xbf16>, vector<16x32xf32> -> vector<16x32xf32>
    %317 = vector.extract_strided_slice %235 {offsets = [0, 0], sizes = [1, 32], strides = [1, 1]} : vector<6x32xf32> to vector<1x32xf32>
    %318 = vector.broadcast %317 : vector<1x32xf32> to vector<16x32xf32>
    %319 = arith.addf %316, %318 : vector<16x32xf32>
    %320 = arith.addf %221, %319 : vector<16x32xf32>
    %321 = vector.extract_strided_slice %235 {offsets = [1, 0], sizes = [1, 32], strides = [1, 1]} : vector<6x32xf32> to vector<1x32xf32>
    %322 = vector.extract_strided_slice %235 {offsets = [2, 0], sizes = [1, 32], strides = [1, 1]} : vector<6x32xf32> to vector<1x32xf32>
    %cst_109 = arith.constant dense<0.000000e+00> : vector<16xf32>
    %323 = vector.multi_reduction <add>, %320, %cst_109 [1] : vector<16x32xf32> to vector<16xf32>
    %324 = vector.shape_cast %323 : vector<16xf32> to vector<16x1xf32>
    %cst_110 = arith.constant 3.200000e+01 : f32
    %325 = vector.broadcast %cst_110 : f32 to vector<16x1xf32>
    %326 = arith.divf %324, %325 : vector<16x1xf32>
    %327 = vector.broadcast %326 : vector<16x1xf32> to vector<16x32xf32>
    %328 = arith.subf %320, %327 : vector<16x32xf32>
    %329 = arith.mulf %328, %328 : vector<16x32xf32>
    %cst_111 = arith.constant dense<0.000000e+00> : vector<16xf32>
    %330 = vector.multi_reduction <add>, %329, %cst_111 [1] : vector<16x32xf32> to vector<16xf32>
    %331 = vector.shape_cast %330 : vector<16xf32> to vector<16x1xf32>
    %cst_112 = arith.constant 3.200000e+01 : f32
    %332 = vector.broadcast %cst_112 : f32 to vector<16x1xf32>
    %333 = arith.divf %331, %332 : vector<16x1xf32>
    %334 = vector.broadcast %326 : vector<16x1xf32> to vector<16x32xf32>
    %335 = arith.subf %320, %334 : vector<16x32xf32>
    %cst_113 = arith.constant 9.99999996E-13 : f32
    %336 = vector.broadcast %cst_113 : f32 to vector<16x1xf32>
    %337 = arith.addf %333, %336 : vector<16x1xf32>
    %338 = math.rsqrt %337 : vector<16x1xf32>
    %339 = vector.broadcast %338 : vector<16x1xf32> to vector<16x32xf32>
    %340 = arith.mulf %335, %339 : vector<16x32xf32>
    %341 = vector.broadcast %321 : vector<1x32xf32> to vector<16x32xf32>
    %342 = arith.mulf %340, %341 : vector<16x32xf32>
    %343 = vector.broadcast %322 : vector<1x32xf32> to vector<16x32xf32>
    %344 = arith.addf %342, %343 : vector<16x32xf32>
    %345 = arith.truncf %344 : vector<16x32xf32> to vector<16x32xbf16>
    %cst_114 = arith.constant dense<0.000000e+00> : vector<16x64xf32>
    %346 = tpu.matmul %345, %229, %cst_114 {dimension_numbers = #tpu.dot_dimension_numbers<[1], [0], [0], [1], [0, 0, 1, 1], [], []>} : vector<16x32xbf16>, vector<32x64xbf16>, vector<16x64xf32> -> vector<16x64xf32>
    %347 = vector.broadcast %233 : vector<1x64xf32> to vector<16x64xf32>
    %348 = arith.addf %346, %347 : vector<16x64xf32>
    %cst_115 = arith.constant 5.000000e-01 : f32
    %349 = vector.broadcast %cst_115 : f32 to vector<16x64xf32>
    %350 = arith.mulf %349, %348 : vector<16x64xf32>
    %cst_116 = arith.constant 4.471500e-02 : f32
    %351 = vector.broadcast %cst_116 : f32 to vector<16x64xf32>
    %352 = arith.mulf %351, %348 : vector<16x64xf32>
    %353 = arith.mulf %352, %348 : vector<16x64xf32>
    %354 = arith.mulf %353, %348 : vector<16x64xf32>
    %355 = arith.addf %348, %354 : vector<16x64xf32>
    %cst_117 = arith.constant 0.797884583 : f32
    %356 = vector.broadcast %cst_117 : f32 to vector<16x64xf32>
    %357 = arith.mulf %356, %355 : vector<16x64xf32>
    %358 = math.tanh %357 : vector<16x64xf32>
    %cst_118 = arith.constant 1.000000e+00 : f32
    %359 = vector.broadcast %cst_118 : f32 to vector<16x64xf32>
    %360 = arith.addf %359, %358 : vector<16x64xf32>
    %361 = arith.mulf %350, %360 : vector<16x64xf32>
    %362 = arith.truncf %361 : vector<16x64xf32> to vector<16x64xbf16>
    %cst_119 = arith.constant dense<0.000000e+00> : vector<16x32xf32>
    %363 = tpu.matmul %362, %231, %cst_119 {dimension_numbers = #tpu.dot_dimension_numbers<[1], [0], [0], [1], [0, 0, 1, 1], [], []>} : vector<16x64xbf16>, vector<64x32xbf16>, vector<16x32xf32> -> vector<16x32xf32>
    %364 = vector.extract_strided_slice %235 {offsets = [3, 0], sizes = [1, 32], strides = [1, 1]} : vector<6x32xf32> to vector<1x32xf32>
    %365 = vector.broadcast %364 : vector<1x32xf32> to vector<16x32xf32>
    %366 = arith.addf %363, %365 : vector<16x32xf32>
    %367 = arith.addf %344, %366 : vector<16x32xf32>
    %368 = vector.extract_strided_slice %235 {offsets = [4, 0], sizes = [1, 32], strides = [1, 1]} : vector<6x32xf32> to vector<1x32xf32>
    %369 = vector.extract_strided_slice %235 {offsets = [5, 0], sizes = [1, 32], strides = [1, 1]} : vector<6x32xf32> to vector<1x32xf32>
    %cst_120 = arith.constant dense<0.000000e+00> : vector<16xf32>
    %370 = vector.multi_reduction <add>, %367, %cst_120 [1] : vector<16x32xf32> to vector<16xf32>
    %371 = vector.shape_cast %370 : vector<16xf32> to vector<16x1xf32>
    %cst_121 = arith.constant 3.200000e+01 : f32
    %372 = vector.broadcast %cst_121 : f32 to vector<16x1xf32>
    %373 = arith.divf %371, %372 : vector<16x1xf32>
    %374 = vector.broadcast %373 : vector<16x1xf32> to vector<16x32xf32>
    %375 = arith.subf %367, %374 : vector<16x32xf32>
    %376 = arith.mulf %375, %375 : vector<16x32xf32>
    %cst_122 = arith.constant dense<0.000000e+00> : vector<16xf32>
    %377 = vector.multi_reduction <add>, %376, %cst_122 [1] : vector<16x32xf32> to vector<16xf32>
    %378 = vector.shape_cast %377 : vector<16xf32> to vector<16x1xf32>
    %cst_123 = arith.constant 3.200000e+01 : f32
    %379 = vector.broadcast %cst_123 : f32 to vector<16x1xf32>
    %380 = arith.divf %378, %379 : vector<16x1xf32>
    %381 = vector.broadcast %373 : vector<16x1xf32> to vector<16x32xf32>
    %382 = arith.subf %367, %381 : vector<16x32xf32>
    %cst_124 = arith.constant 9.99999996E-13 : f32
    %383 = vector.broadcast %cst_124 : f32 to vector<16x1xf32>
    %384 = arith.addf %380, %383 : vector<16x1xf32>
    %385 = math.rsqrt %384 : vector<16x1xf32>
    %386 = vector.broadcast %385 : vector<16x1xf32> to vector<16x32xf32>
    %387 = arith.mulf %382, %386 : vector<16x32xf32>
    %388 = vector.broadcast %368 : vector<1x32xf32> to vector<16x32xf32>
    %389 = arith.mulf %387, %388 : vector<16x32xf32>
    %390 = vector.broadcast %369 : vector<1x32xf32> to vector<16x32xf32>
    %391 = arith.addf %389, %390 : vector<16x32xf32>
    %392 = vector.shape_cast %391 : vector<16x32xf32> to vector<2x8x32xf32>
    %cst_125 = arith.constant dense<0.000000e+00> : vector<2x32xf32>
    %393 = vector.multi_reduction <add>, %392, %cst_125 [1] : vector<2x8x32xf32> to vector<2x32xf32>
    %cst_126 = arith.constant 8.000000e+00 : f32
    %394 = vector.broadcast %cst_126 : f32 to vector<2x32xf32>
    %395 = arith.divf %393, %394 : vector<2x32xf32>
    %c0_127 = arith.constant 0 : index
    %c0_128 = arith.constant 0 : index
    %396 = vector.load %arg11[%c0_127, %c0_128] : memref<2x32xf32, #tpu.memory_space<vmem>>, vector<2x32xf32>
    tpu.vector_store %arg11[%c0_127, %c0_128], %395 {strides = array<i32>} : memref<2x32xf32, #tpu.memory_space<vmem>>, vector<2x32xf32>,
    return
  }
}

</mosaic_0001>

<bundles_post_ra>
// kernel: bert_forward.1
= control target key start
LH: loop header
LB: loop body
LE: loop exit
PB: predicated region body
PF: predicated region fallthrough
CT: control target
= control target key end

     0   :  { %v3565_v1 = vmov 0   ;;  %v3566_v2 = vmov 0.0   ;;  %vm3567_vm0 = vmmov 0   ;;  %s4280_s0 = inlined_call_operand.vmem [shape: s32[16,1], index: 0, kind: input, shape index: {}]   ;;  %s4281_s1 = inlined_call_operand.vmem [shape: f32[2,8], index: 1, kind: input, shape index: {}]   ;;  %s4282_s2 = inlined_call_operand.vmem [shape: bf16[128,32], index: 2, kind: input, shape index: {}]   ;;  %s4283_s3 = inlined_call_operand.vmem [shape: f32[19,32], index: 3, kind: input, shape index: {}]   ;;  %s4284_s4 = inlined_call_operand.vmem [shape: bf16[2,32,96], index: 4, kind: input, shape index: {}]   ;;  %s4285_s5 = inlined_call_operand.vmem [shape: f32[2,1,96], index: 5, kind: input, shape index: {}]   ;;  %s4286_s6 = inlined_call_operand.vmem [shape: bf16[2,32,32], index: 6, kind: input, shape index: {}]   ;;  %s4287_s7 = inlined_call_operand.vmem [shape: bf16[2,32,64], index: 7, kind: input, shape index: {}]   ;;  %s4288_s8 = inlined_call_operand.vmem [shape: f32[2,1,64], index: 8, kind: input, shape index: {}]   ;;  %s4289_s9 = inlined_call_operand.vmem [shape: bf16[2,64,32], index: 9, kind: input, shape index: {}]   ;;  %s4290_s10 = inlined_call_operand.vmem [shape: f32[2,6,32], index: 10, kind: input, shape index: {}]   ;;  %s4291_s11 = inlined_call_operand.hbm [shape: f32[2,32], index: 11, kind: output, shape index: {}]  }
   0x1   :  { %v40_v0 = vld [vmem:[%s4280_s0] sm:$0xff]  ;;  %3390 = vset.pattern.permute.xlu0 %v3565_v1  ;;  %3086 = vmatprep.subr.bf16.mxu0 %v3566_v2  ;;  %v41_v4 = vld [vmem:[%s4280_s0 + $0x8] sm:$0xff]  ;;  %v3423_v6 = vld [vmem:[%s4282_s2 + $0x10] sm:$0xff]  }
   0x2   :  { %v3421_v3 = vld [vmem:[%s4282_s2] sm:$0xff]   ;;  %45 = vperm.xlu0 %3390, %v40_v0   ;;  %3106 = vmatprep.subr.bf16.mxu1 %v3566_v2  ;;  %v3422_v5 = vld [vmem:[%s4282_s2 + $0x8] sm:$0xff]   ;;  %v3424_v7 = vld [vmem:[%s4282_s2 + $0x18] sm:$0xff]  }
   0x3   :  { %3087 = vmatpush3.bf16.msra.mxu0 %v3421_v3  ;;  %3102 = vmatprep.mubr.msk.bf16.mxu0 %vm3567_vm0, %v3566_v2  ;;  %v3425_v8 = vld [vmem:[%s4282_s2 + $0x20] sm:$0xff]   ;;  %v3426_v9 = vld [vmem:[%s4282_s2 + $0x28] sm:$0xff]   ;;  %v3427_v10 = vld [vmem:[%s4282_s2 + $0x30] sm:$0xff]  }
   0x4   :  { %3088 = vmatprep.subr.bf16.mxu0 %v3566_v2  ;;  %3110 = vmatprep.mubr.msk.bf16.mxu1 %vm3567_vm0, %v3566_v2 }
   0x6   :  { %48 = vperm.xlu0 %3390, %v41_v4  }
   0x7   :  { %3089 = vmatpush3.bf16.msra.mxu0 %v3422_v5 }
   0x8   :  { %3090 = vmatprep.subr.bf16.mxu0 %v3566_v2 }
   0xb   :  { %3091 = vmatpush3.bf16.msra.mxu0 %v3423_v6 }
   0xc   :  { %3092 = vmatprep.subr.bf16.mxu0 %v3566_v2 }
   0xf   :  { %3093 = vmatpush3.bf16.msra.mxu0 %v3424_v7 }
  0x10   :  { %3094 = vmatprep.subr.bf16.mxu0 %v3566_v2 }
  0x13   :  { %3095 = vmatpush3.bf16.msra.mxu0 %v3425_v8 }
  0x14   :  { %3096 = vmatprep.subr.bf16.mxu0 %v3566_v2 }
  0x17   :  { %3097 = vmatpush3.bf16.msra.mxu0 %v3426_v9 }
  0x18   :  { %16 = vsyncpa [#allocation3], 0  ;;  %3098 = vmatprep.subr.bf16.mxu0 %v3566_v2  ;;  %v3428_v11 = vld [vmem:[%s4282_s2 + $0x38] sm:$0xff]   ;;  %v42_v12 = vlaneseq  ;;  %v3568_v16 = vmov 1.0|1.0   ;;  %v71_v22 = vld [vmem:[%s4283_s3] sm:$0xff] }
  0x19   :  { %v72_v19 = vld [vmem:[%s4283_s3 + $0x10] sm:$0x7]  ;;  %vm168_vm4 = vcmask 261120   ;;  %v3429_v42 = vld [vmem:[%s4284_s4] sm:$0xff]   ;;  %v3430_v43 = vld [vmem:[%s4284_s4 + $0x8] sm:$0xff]   ;;  %s3569_s25 = smov 96  }
  0x1a   :  { %v43_v14 = vand.u32 127, %v42_v12  ;;  %v3691_v17 = vshrl.u32 %v42_v12, 7  ;;  %3107 = vmatpush3.bf16.msra.mxu1 %v3429_v42  ;;  %v2890_v63 = vld [vmem:[%s4285_s5] ss:$0 sm:$0xff]  ;;  %vm338_vm5 = vcmask 64512   ;;  %vm462_vm6 = vcmask 1043456  }
  0x1b   :  { %3099 = vmatpush3.bf16.msra.mxu0 %v3427_v10  ;;  %3108 = vmatprep.subr.bf16.mxu1 %v3566_v2  ;;  %s3572_s27 = smov 88   ;;  %s3573_s28 = smov 120   ;;  %vm1240_vm7 = vcmask 130048   ;;  %vm1243_vm8 = vcmask 195584   ;;  %vm1457_vm9 = vcmask 523264   ;;  %vm2861_vm10 = vcmask 1041409  }
  0x1c   :  { %3100 = vmatprep.subr.bf16.mxu0 %v3566_v2  ;;  %v3694_v18 = vsub.s32 0, %v3691_v17  ;;  %v3716_v50 = vsub.s32 1, %v3691_v17  ;;  %v3720_v53 = vsub.s32 2, %v3691_v17  ;;  %s3574_s29 = smov 56   ;;  %s3575_s30 = smov 80   ;;  %vm2864_vm11 = vcmask 254976  }
  0x1d   :  { %s3576_s12 = smov 112   ;;  %s3577_s13 = smov 48  }
  0x1e   :  { %v76_v20 = vrot.slane %v72_v19, %v3694_v18  ;;  %3109 = vmatpush3.bf16.msra.mxu1 %v3430_v43  ;;  %v199_v52 = vrot.slane %v72_v19, %v3716_v50  ;;  %v205_v56 = vrot.slane %v72_v19, %v3720_v53  ;;  %s3578_s14 = smov 72   ;;  %s3579_s15 = smov 104  }
  0x1f   :  { %3101 = vmatpush3.bf16.msra.mxu0 %v3428_v11  ;;  %3114 = vmatprep.subr.bf16.mxu1 %v3566_v2  ;;  %s3580_s16 = smov 40   ;;  %s3581_s2 = smov 8  }
  0x20   :  { %3144 = vmatprep.subr.bf16.mxu0 %v3566_v2  ;;  %s3582_s17 = smov 16   ;;  %s3583_s21 = smov 24  }
  0x81   :  { %v46_v13 = vpop.permute.xlu0 %45 }
  0x82   :  { %vm50_vm1 = vcmp.eq.s32.totalorder %v43_v14, %v46_v13  ;;  %v3570_v13 = vmov 1966171168  }
  0x85   :  { %v49_v15 = vpop.permute.xlu0 %48 }
  0x86   :  { %vm51_vm2 = vcmp.eq.s32.totalorder %v43_v14, %v49_v15  ;;  %v213_v14 = vunpack.c.l.s4 %v3570_v13  ;;  %v208_v15 = vld [vmem:[%s4281_s1] sm:$0x3]  ;;  %s3571_s1 = smov 64  }
  0x87   :  { %vm2888_vm3 = vmpackc.low %vm51_vm2, %vm50_vm1  ;;  %v209_v19 = vsub.f32 1.0, %v208_v15 }
  0x88   :  { %3103 = vmatmul.mubr.msk.bf16.vlgmr.msra.gmra.mrb[0].mxu0 %vm2888_vm3, %v3568_v16  ;;  %v214_v16 = vunpack.c.0.s8 %v213_v14 }
  0x89   :  { %3146 = vmatprep.mubr.msk.bf16.mxu0 %vm3567_vm0, %v3566_v2 }
 0x15b   :  { %v159_v21 = vpop.f32.mrb[0].mxu0 }
 0x15c   :  { %v160_v23 = vadd.f32 %v159_v21, %v76_v20  ;;  %v3104_v24 = vpop.f32.mrb[1].mxu0  ;;  %v210_v21 = vmul.f32 -1e+09, %v209_v19 }
 0x15d   :  { %v162_v25 = vpop.f32.mrb[2].mxu0 }
 0x15e   :  { %v163_v26 = vadd.f32 %v162_v25, %v76_v20  ;;  %v3105_v27 = vpop.f32.mrb[3].mxu0  ;;  %v166_v28 = vadd.f32 %v160_v23, %v71_v22  ;;  %v217_v20 = vsub.s32 %v214_v16, %v3691_v17 }
 0x160   :  { %v169_v29 = vsel %vm168_vm4, %v166_v28, 0.0  ;;  %v167_v30 = vadd.f32 %v163_v26, %v71_v22  ;;  %v218_v22 = vrot.slane %v210_v21, %v217_v20 }
 0x161   :  { %170 = vadd.xlane.f32.xlu1 %v169_v29 }
 0x162   :  { %v172_v31 = vsel %vm168_vm4, %v167_v30, 0.0  ;;  %v226_v23 = vrot.slane %v218_v22, %v217_v20  ;;  %v219_v24 = vcombine.high %v218_v22, %v218_v22 }
 0x164   :  { %v3760_v25 = vrot.slane %v226_v23, %v3694_v18  ;;  %v233_v27 = vrot.slane %v219_v24, %v217_v20 }
 0x165   :  { %173 = vadd.xlane.f32.xlu1 %v172_v31 }
 0x1ee   :  { %v171_v32 = vpop.xlane.xlu1 %170 }
 0x1ef   :  { %v176_v33 = vmul.f32 0.03125, %v171_v32 }
 0x1f1   :  { %v178_v34 = vsub.f32 %v166_v28, %v176_v33  ;;  %v3765_v33 = vrot.slane %v233_v27, %v3694_v18 }
 0x1f2   :  { %v174_v35 = vpop.xlane.xlu1 %173 }
 0x1f3   :  { %v177_v36 = vmul.f32 0.03125, %v174_v35  ;;  %v180_v37 = vmul.f32 %v178_v34, %v178_v34 }
 0x1f5   :  { %v179_v38 = vsub.f32 %v167_v30, %v177_v36  ;;  %v182_v39 = vsel %vm168_vm4, %v180_v37, 0.0 }
 0x1f6   :  { %183 = vadd.xlane.f32.xlu0 %v182_v39 }
 0x1f7   :  { %v181_v40 = vmul.f32 %v179_v38, %v179_v38 }
 0x1f9   :  { %v185_v41 = vsel %vm168_vm4, %v181_v40, 0.0 }
 0x1fa   :  { %186 = vadd.xlane.f32.xlu1 %v185_v41 }
 0x283   :  { %v184_v44 = vpop.xlane.xlu0 %183 }
 0x284   :  { %v188_v45 = vmul.f32 0.03125, %v184_v44 }
 0x286   :  { %v190_v46 = vadd.f32 1e-12, %v188_v45 }
 0x287   :  { %v187_v47 = vpop.xlane.xlu1 %186 }
 0x288   :  { %3449 = vrsqrt.f32 %v190_v46  ;;  %v189_v48 = vmul.f32 0.03125, %v187_v47 }
 0x28a   :  { %v191_v49 = vadd.f32 1e-12, %v189_v48 }
 0x28c   :  { %3451 = vrsqrt.f32 %v191_v49 }
 0x292   :  { %v3450_v51 = vpop.eup %3449 }
 0x293   :  { %v194_v54 = vmul.f32 %v3450_v51, %v178_v34 }
 0x295   :  { %v200_v58 = vmul.f32 %v199_v52, %v194_v54 }
 0x296   :  { %v3452_v55 = vpop.eup %3451 }
 0x297   :  { %v195_v57 = vmul.f32 %v3452_v55, %v179_v38  ;;  %v3723_v60 = vadd.f32 %v205_v56, %v200_v58 }
 0x299   :  { %v201_v59 = vmul.f32 %v199_v52, %v195_v57 }
 0x29b   :  { %v3725_v61 = vadd.f32 %v205_v56, %v201_v59 }
 0x29d   :  { %v267_v62 = vpack.c.bf16 %v3725_v61, %v3723_v60 }
 0x29f   :  { %3111 = vmatmul.mubr.msk.bf16.vlgmr.msra.gmra.mrb[0].mxu1 %vm168_vm4, %v267_v62 }
 0x2a0   :  { %3116 = vmatprep.mubr.msk.bf16.mxu1 %vm3567_vm0, %v3566_v2 }
 0x372   :  { %v323_v0 = vpop.f32.mrb[0].mxu1 }
 0x373   :  { %v324_v1 = vadd.f32 %v2890_v63, %v323_v0  ;;  %v3112_v3 = vpop.f32.mrb[1].mxu1 }
 0x374   :  { %v326_v4 = vpop.f32.mrb[2].mxu1 }
 0x375   :  { %v3735_v5 = vpack.c.bf16 %v324_v1, %v324_v1  ;;  %v327_v6 = vadd.f32 %v2890_v63, %v326_v4  ;;  %v3113_v7 = vpop.f32.mrb[3].mxu1 }
 0x377   :  { %336 = vrot.lane.b32.xlu1 %v3735_v5, %s3569_s25  ;;  %v3739_v8 = vpack.c.bf16 %v327_v6, %v327_v6 }
 0x37b   :  { %385 = vrot.lane.b32.xlu1 %v3739_v8, %s3569_s25 }
 0x3e9   :  { %v337_v9 = vpop.permute.xlu1 %336 }
 0x3ea   :  { %v343_v10 = vsel %vm338_vm5, %v337_v9, 0 }
 0x3eb   :  { %3115 = vmatpush3.bf16.xpose.msra.mxu1 %v343_v10 }
 0x3ec   :  { %3120 = vmatprep.subr.bf16.mxu1 %v3566_v2 }
 0x3ed   :  { %v386_v11 = vpop.permute.xlu1 %385 }
 0x3ee   :  { %v391_v12 = vsel %vm338_vm5, %v386_v11, 0 }
 0x3f2   :  { %3117 = vmatmul.mubr.msk.bf16.vlgmr.msra.gmra.mrb[4].mxu1 %vm338_vm5, %v3735_v5 }
 0x3f3   :  { %3121 = vmatpush3.bf16.xpose.msra.mxu1 %v391_v12  ;;  %3122 = vmatprep.mubr.msk.bf16.mxu1 %vm3567_vm0, %v3566_v2 }
 0x3f4   :  { %3126 = vmatprep.subr.bf16.mxu1 %v3566_v2 }
 0x3fa   :  { %3123 = vmatmul.mubr.msk.bf16.vlgmr.msra.gmra.mrb[8].mxu1 %vm338_vm5, %v3739_v8 }
 0x3fb   :  { %3128 = vmatprep.mubr.msk.bf16.mxu1 %vm3567_vm0, %v3566_v2 }
 0x4c5   :  { %v379_v26 = vpop.f32.mrb[4].mxu1 }
 0x4c6   :  { %v380_v28 = vadd.f32 %v379_v26, %v3760_v25  ;;  %v3118_v29 = vpop.f32.mrb[5].mxu1 }
 0x4c7   :  { %v382_v30 = vpop.f32.mrb[6].mxu1 }
 0x4c8   :  { %v3119_v31 = vpop.f32.mrb[7].mxu1  ;;  %v433_v32 = vsel %vm338_vm5, %v380_v28, -inf }
 0x4c9   :  { %434 = vmax.xlane.f32.xlu1 %v433_v32 }
 0x4cd   :  { %v427_v34 = vpop.f32.mrb[8].mxu1 }
 0x4ce   :  { %v428_v35 = vadd.f32 %v427_v34, %v3765_v33  ;;  %v3124_v36 = vpop.f32.mrb[9].mxu1 }
 0x4cf   :  { %v430_v37 = vpop.f32.mrb[10].mxu1 }
 0x4d0   :  { %v3125_v38 = vpop.f32.mrb[11].mxu1  ;;  %v436_v39 = vsel %vm338_vm5, %v428_v35, -inf }
 0x4d1   :  { %437 = vmax.xlane.f32.xlu0 %v436_v39 }
 0x4da   :  { %506 = vrot.lane.b32.xlu1 %v3739_v8, %s3571_s1 }
 0x4e7   :  { %457 = vrot.lane.b32.xlu0 %v3735_v5, %s3571_s1 }
 0x556   :  { %v435_v40 = vpop.xlane.xlu1 %434 }
 0x557   :  { %v439_v41 = vsub.f32 %v380_v28, %v435_v40 }
 0x559   :  { %v441_v42 = vmul.f32 1.442695, %v439_v41 }
 0x55a   :  { %v507_v57 = vpop.permute.xlu1 %506 }
 0x55b   :  { %3453 = vpow2.f32 %v441_v42  ;;  %v512_v59 = vsel %vm462_vm6, %v507_v57, 0 }
 0x55e   :  { %v438_v43 = vpop.xlane.xlu0 %437 }
 0x55f   :  { %v440_v48 = vsub.f32 %v428_v35, %v438_v43 }
 0x561   :  { %v443_v49 = vmul.f32 1.442695, %v440_v48 }
 0x562   :  { %v458_v44 = vpop.permute.xlu0 %457 }
 0x563   :  { %v464_v45 = vsel %vm462_vm6, %v458_v44, 0  ;;  %3455 = vpow2.f32 %v443_v49 }
 0x564   :  { %3127 = vmatpush3.bf16.msra.mxu1 %v464_v45 }
 0x565   :  { %v3454_v46 = vpop.eup %3453  ;;  %3132 = vmatprep.subr.bf16.mxu1 %v3566_v2 }
 0x566   :  { %v445_v47 = vsel %vm338_vm5, %v3454_v46, 0.0 }
 0x567   :  { %446 = vadd.xlane.f32.xlu0 %v445_v47 }
 0x56d   :  { %v3456_v51 = vpop.eup %3455 }
 0x56e   :  { %v448_v52 = vsel %vm338_vm5, %v3456_v51, 0.0 }
 0x57d   :  { %556 = vrot.lane.b32.xlu0 %v3735_v5, %s3572_s27 }
 0x59c   :  { %449 = vadd.xlane.f32.xlu0 %v448_v52 }
 0x5b2   :  { %606 = vrot.lane.b32.xlu0 %v3739_v8, %s3572_s27 }
 0x5b6   :  { %554 = vrot.lane.b32.xlu0 %v3735_v5, %s3573_s28 }
 0x5ba   :  { %604 = vrot.lane.b32.xlu0 %v3739_v8, %s3573_s28 }
 0x5f4   :  { %v447_v54 = vpop.xlane.xlu0 %446 }
 0x5f5   :  { %3457 = vrcp.f32 %v447_v54 }
 0x5f8   :  { %v557_v62 = vpop.permute.xlu0 %556 }
 0x5f9   :  { %v562_v10 = vsel %vm338_vm5, %v557_v62, 0 }
 0x5ff   :  { %v3458_v55 = vpop.eup %3457 }
 0x600   :  { %v453_v56 = vmul.f32 %v3458_v55, %v3454_v46 }
 0x602   :  { %v455_v58 = vpack.c.bf16 %v453_v56, %v453_v56 }
 0x604   :  { %3129 = vmatmul.mubr.msk.bf16.vlgmr.msra.gmra.mrb[12].mxu1 %vm338_vm5, %v455_v58 }
 0x605   :  { %3133 = vmatpush3.bf16.msra.mxu1 %v512_v59  ;;  %3134 = vmatprep.mubr.msk.bf16.mxu1 %vm3567_vm0, %v3566_v2 }
 0x606   :  { %3138 = vmatprep.subr.bf16.mxu1 %v3566_v2 }
 0x629   :  { %v450_v63 = vpop.xlane.xlu0 %449 }
 0x62a   :  { %3459 = vrcp.f32 %v450_v63 }
 0x62d   :  { %v607_v0 = vpop.permute.xlu0 %606 }
 0x62e   :  { %v612_v1 = vsel %vm338_vm5, %v607_v0, 0 }
 0x62f   :  { %3145 = vmatpush3.bf16.xpose.msra.mxu0 %v612_v1 }
 0x630   :  { %3156 = vmatprep.subr.bf16.mxu0 %v3566_v2 }
 0x631   :  { %v555_v3 = vpop.permute.xlu0 %554 }
 0x634   :  { %v3460_v4 = vpop.eup %3459 }
 0x635   :  { %v454_v6 = vmul.f32 %v3460_v4, %v3456_v51  ;;  %v605_v7 = vpop.permute.xlu0 %604 }
 0x636   :  { %3147 = vmatmul.mubr.msk.bf16.vlgmr.msra.gmra.mrb[4].mxu0 %vm338_vm5, %v605_v7 }
 0x637   :  { %v456_v9 = vpack.c.bf16 %v454_v6, %v454_v6  ;;  %3158 = vmatprep.mubr.msk.bf16.mxu0 %vm3567_vm0, %v3566_v2 }
 0x639   :  { %3135 = vmatmul.mubr.msk.bf16.vlgmr.msra.gmra.mrb[16].mxu1 %vm338_vm5, %v456_v9 }
 0x63a   :  { %3139 = vmatpush3.bf16.xpose.msra.mxu1 %v562_v10  ;;  %3140 = vmatprep.mubr.msk.bf16.mxu1 %vm3567_vm0, %v3566_v2 }
 0x63b   :  { %3150 = vmatprep.subr.bf16.mxu1 %v3566_v2 }
 0x641   :  { %3141 = vmatmul.mubr.msk.bf16.vlgmr.msra.gmra.mrb[20].mxu1 %vm338_vm5, %v555_v3 }
 0x642   :  { %3152 = vmatprep.mubr.msk.bf16.mxu1 %vm3567_vm0, %v3566_v2 }
 0x6d7   :  { %v3803_v11 = vpop.f32.mrb[12].mxu1 }
 0x6d8   :  { %v3130_v12 = vpop.f32.mrb[13].mxu1 }
 0x6d9   :  { %v503_v13 = vpop.f32.mrb[14].mxu1 }
 0x6da   :  { %v3131_v14 = vpop.f32.mrb[15].mxu1 }
 0x709   :  { %v648_v15 = vpop.f32.mrb[4].mxu0 }
 0x70a   :  { %v649_v16 = vadd.f32 %v648_v15, %v3765_v33  ;;  %v3148_v19 = vpop.f32.mrb[5].mxu0 }
 0x70b   :  { %v651_v20 = vpop.f32.mrb[6].mxu0 }
 0x70c   :  { %v3806_v21 = vpop.f32.mrb[16].mxu1  ;;  %v3149_v22 = vpop.f32.mrb[7].mxu0  ;;  %v657_v23 = vsel %vm338_vm5, %v649_v16, -inf }
 0x70d   :  { %v3136_v24 = vpop.f32.mrb[17].mxu1  ;;  %658 = vmax.xlane.f32.xlu0 %v657_v23 }
 0x70e   :  { %v551_v26 = vpop.f32.mrb[18].mxu1 }
 0x70f   :  { %v3137_v27 = vpop.f32.mrb[19].mxu1 }
 0x714   :  { %v598_v28 = vpop.f32.mrb[20].mxu1 }
 0x715   :  { %v599_v29 = vadd.f32 %v598_v28, %v3760_v25  ;;  %v3142_v30 = vpop.f32.mrb[21].mxu1 }
 0x716   :  { %v601_v31 = vpop.f32.mrb[22].mxu1 }
 0x717   :  { %v3143_v32 = vpop.f32.mrb[23].mxu1  ;;  %v654_v34 = vsel %vm338_vm5, %v599_v29, -inf }
 0x718   :  { %655 = vmax.xlane.f32.xlu1 %v654_v34 }
 0x723   :  { %678 = vrot.lane.b32.xlu0 %v3735_v5, %s3574_s29 }
 0x79a   :  { %v659_v35 = vpop.xlane.xlu0 %658 }
 0x79b   :  { %v661_v36 = vsub.f32 %v649_v16, %v659_v35 }
 0x79d   :  { %v664_v37 = vmul.f32 1.442695, %v661_v36 }
 0x79e   :  { %v679_v38 = vpop.permute.xlu0 %678 }
 0x79f   :  { %3461 = vpow2.f32 %v664_v37  ;;  %v684_v39 = vsel %vm462_vm6, %v679_v38, 0 }
 0x7a0   :  { %3151 = vmatpush3.bf16.msra.mxu1 %v684_v39 }
 0x7a1   :  { %3162 = vmatprep.subr.bf16.mxu1 %v3566_v2 }
 0x7a5   :  { %v656_v40 = vpop.xlane.xlu1 %655 }
 0x7a6   :  { %v660_v41 = vsub.f32 %v599_v29, %v656_v40 }
 0x7a8   :  { %v662_v42 = vmul.f32 1.442695, %v660_v41 }
 0x7a9   :  { %v3462_v43 = vpop.eup %3461 }
 0x7aa   :  { %3463 = vpow2.f32 %v662_v42  ;;  %v669_v44 = vsel %vm338_vm5, %v3462_v43, 0.0 }
 0x7ab   :  { %670 = vadd.xlane.f32.xlu1 %v669_v44 }
 0x7b4   :  { %v3464_v45 = vpop.eup %3463 }
 0x7b5   :  { %v666_v46 = vsel %vm338_vm5, %v3464_v45, 0.0 }
 0x7b6   :  { %667 = vadd.xlane.f32.xlu0 %v666_v46 }
 0x7bc   :  { %726 = vrot.lane.b32.xlu1 %v3739_v8, %s3574_s29 }
 0x7c0   :  { %776 = vrot.lane.b32.xlu1 %v3735_v5, %s3575_s30 }
 0x7c4   :  { %774 = vrot.lane.b32.xlu1 %v3735_v5, %s3576_s12 }
 0x7cc   :  { %826 = vrot.lane.b32.xlu0 %v3739_v8, %s3575_s30 }
 0x7d0   :  { %824 = vrot.lane.b32.xlu0 %v3739_v8, %s3576_s12 }
 0x838   :  { %v671_v47 = vpop.xlane.xlu1 %670 }
 0x839   :  { %3465 = vrcp.f32 %v671_v47 }
 0x83c   :  { %v727_v48 = vpop.permute.xlu1 %726 }
 0x83d   :  { %v732_v49 = vsel %vm462_vm6, %v727_v48, 0 }
 0x83e   :  { %3157 = vmatpush3.bf16.msra.mxu0 %v732_v49 }
 0x83f   :  { %3168 = vmatprep.subr.bf16.mxu0 %v3566_v2 }
 0x840   :  { %v777_v63 = vpop.permute.xlu1 %776 }
 0x841   :  { %v782_v1 = vsel %vm338_vm5, %v777_v63, 0 }
 0x843   :  { %v3466_v51 = vpop.eup %3465  ;;  %v668_v52 = vpop.xlane.xlu0 %667 }
 0x844   :  { %v675_v54 = vmul.f32 %v3466_v51, %v3462_v43  ;;  %3467 = vrcp.f32 %v668_v52  ;;  %v775_v3 = vpop.permute.xlu1 %774 }
 0x846   :  { %v677_v55 = vpack.c.bf16 %v675_v54, %v675_v54 }
 0x847   :  { %v827_v56 = vpop.permute.xlu0 %826 }
 0x848   :  { %v832_v57 = vsel %vm338_vm5, %v827_v56, 0  ;;  %3159 = vmatmul.mubr.msk.bf16.vlgmr.msra.gmra.mrb[8].mxu0 %vm338_vm5, %v677_v55 }
 0x849   :  { %3169 = vmatpush3.bf16.xpose.msra.mxu0 %v832_v57  ;;  %3170 = vmatprep.mubr.msk.bf16.mxu0 %vm3567_vm0, %v3566_v2 }
 0x84a   :  { %3180 = vmatprep.subr.bf16.mxu0 %v3566_v2 }
 0x84b   :  { %v825_v62 = vpop.permute.xlu0 %824 }
 0x84e   :  { %v3468_v58 = vpop.eup %3467 }
 0x84f   :  { %v674_v59 = vmul.f32 %v3468_v58, %v3464_v45 }
 0x850   :  { %3171 = vmatmul.mubr.msk.bf16.vlgmr.msra.gmra.mrb[12].mxu0 %vm338_vm5, %v825_v62 }
 0x851   :  { %v676_v0 = vpack.c.bf16 %v674_v59, %v674_v59  ;;  %3182 = vmatprep.mubr.msk.bf16.mxu0 %vm3567_vm0, %v3566_v2 }
 0x853   :  { %3153 = vmatmul.mubr.msk.bf16.vlgmr.msra.gmra.mrb[24].mxu1 %vm338_vm5, %v676_v0 }
 0x854   :  { %3163 = vmatpush3.bf16.xpose.msra.mxu1 %v782_v1  ;;  %3164 = vmatprep.mubr.msk.bf16.mxu1 %vm3567_vm0, %v3566_v2 }
 0x855   :  { %3174 = vmatprep.subr.bf16.mxu1 %v3566_v2 }
 0x85b   :  { %3165 = vmatmul.mubr.msk.bf16.vlgmr.msra.gmra.mrb[28].mxu1 %vm338_vm5, %v775_v3 }
 0x85c   :  { %3176 = vmatprep.mubr.msk.bf16.mxu1 %vm3567_vm0, %v3566_v2 }
 0x91b   :  { %v3845_v4 = vpop.f32.mrb[8].mxu0 }
 0x91c   :  { %v3160_v6 = vpop.f32.mrb[9].mxu0 }
 0x91d   :  { %v771_v7 = vpop.f32.mrb[10].mxu0 }
 0x91e   :  { %v3161_v9 = vpop.f32.mrb[11].mxu0 }
 0x923   :  { %v868_v10 = vpop.f32.mrb[12].mxu0 }
 0x924   :  { %v869_v12 = vadd.f32 %v868_v10, %v3765_v33  ;;  %v3172_v13 = vpop.f32.mrb[13].mxu0 }
 0x925   :  { %v871_v14 = vpop.f32.mrb[14].mxu0 }
 0x926   :  { %v3848_v15 = vpop.f32.mrb[24].mxu1  ;;  %v3173_v16 = vpop.f32.mrb[15].mxu0  ;;  %v877_v19 = vsel %vm338_vm5, %v869_v12, -inf }
 0x927   :  { %v3391_v20 = vpack.i.bf16 %v3845_v4, %v3848_v15  ;;  %v3154_v22 = vpop.f32.mrb[25].mxu1  ;;  %878 = vmax.xlane.f32.xlu0 %v877_v19 }
 0x928   :  { %v723_v23 = vpop.f32.mrb[26].mxu1 }
 0x929   :  { %v3155_v24 = vpop.f32.mrb[27].mxu1 }
 0x92e   :  { %v818_v26 = vpop.f32.mrb[28].mxu1 }
 0x92f   :  { %v819_v27 = vadd.f32 %v818_v26, %v3760_v25  ;;  %v3166_v28 = vpop.f32.mrb[29].mxu1 }
 0x930   :  { %v821_v29 = vpop.f32.mrb[30].mxu1 }
 0x931   :  { %v3167_v30 = vpop.f32.mrb[31].mxu1  ;;  %v874_v31 = vsel %vm338_vm5, %v819_v27, -inf }
 0x932   :  { %875 = vmax.xlane.f32.xlu1 %v874_v31 }
 0x93d   :  { %898 = vrot.lane.b32.xlu0 %v3735_v5, %s3577_s13 }
 0x9b4   :  { %v879_v32 = vpop.xlane.xlu0 %878 }
 0x9b5   :  { %v881_v34 = vsub.f32 %v869_v12, %v879_v32 }
 0x9b7   :  { %v884_v35 = vmul.f32 1.442695, %v881_v34 }
 0x9b8   :  { %v899_v36 = vpop.permute.xlu0 %898 }
 0x9b9   :  { %3469 = vpow2.f32 %v884_v35  ;;  %v904_v37 = vsel %vm462_vm6, %v899_v36, 0 }
 0x9ba   :  { %3175 = vmatpush3.bf16.msra.mxu1 %v904_v37 }
 0x9bb   :  { %3186 = vmatprep.subr.bf16.mxu1 %v3566_v2 }
 0x9bf   :  { %v876_v38 = vpop.xlane.xlu1 %875 }
 0x9c0   :  { %v880_v39 = vsub.f32 %v819_v27, %v876_v38 }
 0x9c2   :  { %v882_v40 = vmul.f32 1.442695, %v880_v39 }
 0x9c3   :  { %v3470_v41 = vpop.eup %3469 }
 0x9c4   :  { %3471 = vpow2.f32 %v882_v40  ;;  %v889_v42 = vsel %vm338_vm5, %v3470_v41, 0.0 }
 0x9c5   :  { %890 = vadd.xlane.f32.xlu1 %v889_v42 }
 0x9ce   :  { %v3472_v43 = vpop.eup %3471 }
 0x9cf   :  { %v886_v44 = vsel %vm338_vm5, %v3472_v43, 0.0 }
 0x9d0   :  { %887 = vadd.xlane.f32.xlu0 %v886_v44 }
 0x9d6   :  { %946 = vrot.lane.b32.xlu1 %v3739_v8, %s3577_s13 }
 0x9da   :  { %996 = vrot.lane.b32.xlu1 %v3735_v5, %s3578_s14 }
 0x9de   :  { %994 = vrot.lane.b32.xlu1 %v3735_v5, %s3579_s15 }
 0x9e6   :  { %1046 = vrot.lane.b32.xlu0 %v3739_v8, %s3578_s14 }
 0x9ea   :  { %1044 = vrot.lane.b32.xlu0 %v3739_v8, %s3579_s15 }
 0xa52   :  { %v891_v45 = vpop.xlane.xlu1 %890 }
 0xa53   :  { %3473 = vrcp.f32 %v891_v45 }
 0xa56   :  { %v947_v46 = vpop.permute.xlu1 %946 }
 0xa57   :  { %v952_v47 = vsel %vm462_vm6, %v947_v46, 0 }
 0xa58   :  { %3181 = vmatpush3.bf16.msra.mxu0 %v952_v47 }
 0xa59   :  { %3192 = vmatprep.subr.bf16.mxu0 %v3566_v2 }
 0xa5a   :  { %v997_v59 = vpop.permute.xlu1 %996 }
 0xa5b   :  { %v1002_v63 = vsel %vm338_vm5, %v997_v59, 0 }
 0xa5d   :  { %v3474_v48 = vpop.eup %3473  ;;  %v888_v49 = vpop.xlane.xlu0 %887 }
 0xa5e   :  { %v895_v51 = vmul.f32 %v3474_v48, %v3470_v41  ;;  %3475 = vrcp.f32 %v888_v49  ;;  %v995_v0 = vpop.permute.xlu1 %994 }
 0xa60   :  { %v897_v52 = vpack.c.bf16 %v895_v51, %v895_v51 }
 0xa61   :  { %v1047_v54 = vpop.permute.xlu0 %1046 }
 0xa62   :  { %v1052_v55 = vsel %vm338_vm5, %v1047_v54, 0  ;;  %3183 = vmatmul.mubr.msk.bf16.vlgmr.msra.gmra.mrb[16].mxu0 %vm338_vm5, %v897_v52  ;;  %v3431_v52 = vld [vmem:[%s4286_s6] sm:$0xff]  }
 0xa63   :  { %3193 = vmatpush3.bf16.xpose.msra.mxu0 %v1052_v55  ;;  %3194 = vmatprep.mubr.msk.bf16.mxu0 %vm3567_vm0, %v3566_v2 }
 0xa64   :  { %3204 = vmatprep.subr.bf16.mxu0 %v3566_v2 }
 0xa65   :  { %v1045_v58 = vpop.permute.xlu0 %1044 }
 0xa68   :  { %v3476_v56 = vpop.eup %3475 }
 0xa69   :  { %v894_v57 = vmul.f32 %v3476_v56, %v3472_v43 }
 0xa6a   :  { %3195 = vmatmul.mubr.msk.bf16.vlgmr.msra.gmra.mrb[20].mxu0 %vm338_vm5, %v1045_v58 }
 0xa6b   :  { %v896_v62 = vpack.c.bf16 %v894_v57, %v894_v57  ;;  %3206 = vmatprep.mubr.msk.bf16.mxu0 %vm3567_vm0, %v3566_v2  ;;  %v3432_v57 = vld [vmem:[%s4286_s6 + $0x8] sm:$0xff]  }
 0xa6d   :  { %3177 = vmatmul.mubr.msk.bf16.vlgmr.msra.gmra.mrb[32].mxu1 %vm338_vm5, %v896_v62 }
 0xa6e   :  { %3187 = vmatpush3.bf16.xpose.msra.mxu1 %v1002_v63  ;;  %3188 = vmatprep.mubr.msk.bf16.mxu1 %vm3567_vm0, %v3566_v2 }
 0xa6f   :  { %3198 = vmatprep.subr.bf16.mxu1 %v3566_v2 }
 0xa75   :  { %3189 = vmatmul.mubr.msk.bf16.vlgmr.msra.gmra.mrb[36].mxu1 %vm338_vm5, %v995_v0 }
 0xa76   :  { %3200 = vmatprep.mubr.msk.bf16.mxu1 %vm3567_vm0, %v3566_v2 }
 0xb35   :  { %v988_v1 = vpop.f32.mrb[16].mxu0 }
 0xb36   :  { %v3184_v3 = vpop.f32.mrb[17].mxu0 }
 0xb37   :  { %v991_v6 = vpop.f32.mrb[18].mxu0 }
 0xb38   :  { %v3185_v7 = vpop.f32.mrb[19].mxu0 }
 0xb3d   :  { %v1088_v9 = vpop.f32.mrb[20].mxu0 }
 0xb3e   :  { %v1089_v10 = vadd.f32 %v1088_v9, %v3765_v33  ;;  %v3196_v12 = vpop.f32.mrb[21].mxu0 }
 0xb3f   :  { %v1091_v13 = vpop.f32.mrb[22].mxu0 }
 0xb40   :  { %v940_v14 = vpop.f32.mrb[32].mxu1  ;;  %v3197_v16 = vpop.f32.mrb[23].mxu0  ;;  %v1097_v19 = vsel %vm338_vm5, %v1089_v10, -inf }
 0xb41   :  { %v3396_v22 = vpack.i.bf16 %v988_v1, %v940_v14  ;;  %v3178_v23 = vpop.f32.mrb[33].mxu1  ;;  %1098 = vmax.xlane.f32.xlu0 %v1097_v19 }
 0xb42   :  { %v943_v24 = vpop.f32.mrb[34].mxu1 }
 0xb43   :  { %v3179_v26 = vpop.f32.mrb[35].mxu1 }
 0xb48   :  { %v1038_v27 = vpop.f32.mrb[36].mxu1 }
 0xb49   :  { %v1039_v28 = vadd.f32 %v1038_v27, %v3760_v25  ;;  %v3190_v29 = vpop.f32.mrb[37].mxu1 }
 0xb4a   :  { %v1041_v30 = vpop.f32.mrb[38].mxu1 }
 0xb4b   :  { %v3191_v31 = vpop.f32.mrb[39].mxu1  ;;  %v1094_v32 = vsel %vm338_vm5, %v1039_v28, -inf }
 0xb4c   :  { %1095 = vmax.xlane.f32.xlu1 %v1094_v32 }
 0xbce   :  { %v1099_v34 = vpop.xlane.xlu0 %1098 }
 0xbcf   :  { %v1101_v35 = vsub.f32 %v1089_v10, %v1099_v34 }
 0xbd1   :  { %v1104_v36 = vmul.f32 1.442695, %v1101_v35 }
 0xbd3   :  { %3477 = vpow2.f32 %v1104_v36 }
 0xbd9   :  { %v1096_v37 = vpop.xlane.xlu1 %1095 }
 0xbda   :  { %v1100_v38 = vsub.f32 %v1039_v28, %v1096_v37 }
 0xbdc   :  { %v1102_v39 = vmul.f32 1.442695, %v1100_v38 }
 0xbdd   :  { %v3478_v40 = vpop.eup %3477 }
 0xbde   :  { %3479 = vpow2.f32 %v1102_v39  ;;  %v1109_v41 = vsel %vm338_vm5, %v3478_v40, 0.0 }
 0xbdf   :  { %1110 = vadd.xlane.f32.xlu1 %v1109_v41 }
 0xbe8   :  { %v3480_v42 = vpop.eup %3479 }
 0xbe9   :  { %v1106_v43 = vsel %vm338_vm5, %v3480_v42, 0.0 }
 0xbea   :  { %1107 = vadd.xlane.f32.xlu0 %v1106_v43 }
 0xbf0   :  { %1166 = vrot.lane.b32.xlu1 %v3739_v8, %s3580_s16 }
 0xbf4   :  { %3392 = vrot.lane.b32.xlu1 %v3391_v20, %s3581_s2 }
 0xc00   :  { %1118 = vrot.lane.b32.xlu0 %v3735_v5, %s3580_s16 }
 0xc04   :  { %3397 = vrot.lane.b32.xlu0 %v3396_v22, %s3582_s17 }
 0xc6c   :  { %v1111_v44 = vpop.xlane.xlu1 %1110 }
 0xc6d   :  { %3481 = vrcp.f32 %v1111_v44 }
 0xc70   :  { %v1167_v45 = vpop.permute.xlu1 %1166 }
 0xc71   :  { %v1172_v46 = vsel %vm462_vm6, %v1167_v45, 0 }
 0xc72   :  { %3205 = vmatpush3.bf16.msra.mxu0 %v1172_v46 }
 0xc73   :  { %3218 = vmatprep.subr.bf16.mxu0 %v3566_v2 }
 0xc74   :  { %v3393_v3 = vpop.permute.xlu1 %3392 }
 0xc75   :  { %v3395_v7 = vunpack.i.h.bf16 %v3393_v3  ;;  %v3394_v9 = vunpack.i.l.bf16 %v3393_v3  ;;  %v3435_v3 = vld [vmem:[%s4289_s9] sm:$0xff]  }
 0xc77   :  { %v3482_v8 = vpop.eup %3481  ;;  %v1108_v47 = vpop.xlane.xlu0 %1107  ;;  %v1239_v14 = vsel %vm338_vm5, %v3806_v21, %v3395_v7  ;;  %v1238_v16 = vsel %vm338_vm5, %v3803_v11, %v3394_v9  ;;  %v3937_v11 = vld [vmem:[%s4290_s10] sm:$0x3f]  ;;  %v3437_v7 = vld [vmem:[%s4289_s9 + $0x10] sm:$0xff]   ;;  %v3438_v9 = vld [vmem:[%s4289_s9 + $0x18] sm:$0xff]  }
 0xc78   :  { %v1115_v48 = vmul.f32 %v3482_v8, %v3478_v40  ;;  %3483 = vrcp.f32 %v1108_v47  ;;  %v1250_v21 = vrot.slane %v3937_v11, %v3694_v18 }
 0xc7a   :  { %v1117_v4 = vpack.c.bf16 %v1115_v48, %v1115_v48  ;;  %v3434_v48 = vld [vmem:[%s4287_s7 + $0x8] sm:$0xff]  }
 0xc7b   :  { %v1119_v15 = vpop.permute.xlu0 %1118 }
 0xc7c   :  { %v1124_v20 = vsel %vm462_vm6, %v1119_v15, 0  ;;  %3207 = vmatmul.mubr.msk.bf16.vlgmr.msra.gmra.mrb[24].mxu0 %vm338_vm5, %v1117_v4 }
 0xc7d   :  { %3199 = vmatpush3.bf16.msra.mxu1 %v1124_v20  ;;  %3222 = vmatprep.mubr.msk.bf16.mxu0 %vm3567_vm0, %v3566_v2 }
 0xc7e   :  { %3210 = vmatprep.subr.bf16.mxu1 %v3566_v2 }
 0xc7f   :  { %v3398_v6 = vpop.permute.xlu0 %3397 }
 0xc80   :  { %v3400_v10 = vunpack.i.h.bf16 %v3398_v6  ;;  %v3399_v12 = vunpack.i.l.bf16 %v3398_v6  ;;  %v3436_v6 = vld [vmem:[%s4289_s9 + $0x8] sm:$0xff]  }
 0xc82   :  { %v3484_v5 = vpop.eup %3483  ;;  %v1242_v23 = vsel %vm1240_vm7, %v1239_v14, %v3400_v10  ;;  %v1241_v24 = vsel %vm1240_vm7, %v1238_v16, %v3399_v12  ;;  %v2915_v10 = vld [vmem:[%s4288_s8] ss:$0 sm:$0xff] }
 0xc83   :  { %v1114_v49 = vmul.f32 %v3484_v5, %v3480_v42 }
 0xc85   :  { %v1116_v51 = vpack.c.bf16 %v1114_v49, %v1114_v49 }
 0xc87   :  { %3201 = vmatmul.mubr.msk.bf16.vlgmr.msra.gmra.mrb[40].mxu1 %vm338_vm5, %v1116_v51 }
 0xc88   :  { %3214 = vmatprep.mubr.msk.bf16.mxu1 %vm3567_vm0, %v3566_v2  ;;  %3211 = vmatpush3.bf16.msra.mxu1 %v3431_v52 }
 0xc89   :  { %3212 = vmatprep.subr.bf16.mxu1 %v3566_v2 }
 0xc8c   :  { %3213 = vmatpush3.bf16.msra.mxu1 %v3432_v57 }
 0xc8d   :  { %3226 = vmatprep.subr.bf16.mxu1 %v3566_v2 }
 0xd4f   :  { %v1208_v54 = vpop.f32.mrb[24].mxu0 }
 0xd50   :  { %v3208_v55 = vpop.f32.mrb[25].mxu0 }
 0xd51   :  { %v1211_v56 = vpop.f32.mrb[26].mxu0 }
 0xd52   :  { %v3209_v58 = vpop.f32.mrb[27].mxu0 }
 0xd5a   :  { %v1160_v59 = vpop.f32.mrb[40].mxu1 }
 0xd5b   :  { %v3401_v62 = vpack.i.bf16 %v1208_v54, %v1160_v59  ;;  %v3202_v63 = vpop.f32.mrb[41].mxu1  ;;  %v1338_v54 = vrot.slane %v3937_v11, %v3716_v50  ;;  %v1344_v59 = vrot.slane %v3937_v11, %v3720_v53 }
 0xd5c   :  { %v1163_v0 = vpop.f32.mrb[42].mxu1 }
 0xd5d   :  { %v3203_v1 = vpop.f32.mrb[43].mxu1  ;;  %3402 = vrot.lane.b32.xlu1 %v3401_v62, %s3583_s21 }
 0xdcf   :  { %v3403_v13 = vpop.permute.xlu1 %3402 }
 0xdd0   :  { %v3405_v19 = vunpack.i.h.bf16 %v3403_v13  ;;  %v3404_v22 = vunpack.i.l.bf16 %v3403_v13 }
 0xdd2   :  { %v1245_v26 = vsel %vm1243_vm8, %v1242_v23, %v3405_v19  ;;  %v1244_v27 = vsel %vm1243_vm8, %v1241_v24, %v3404_v22 }
 0xdd3   :  { %v1246_v28 = vpack.c.bf16 %v1245_v26, %v1244_v27 }
 0xdd5   :  { %3215 = vmatmul.mubr.msk.bf16.vlgmr.msra.gmra.mrb[44].mxu1 %vm168_vm4, %v1246_v28 }
 0xdd6   :  { %3234 = vmatprep.mubr.msk.bf16.mxu1 %vm3567_vm0, %v3566_v2  ;;  %3227 = vmatpush3.bf16.msra.mxu1 %v3435_v3 }
 0xdd7   :  { %3228 = vmatprep.subr.bf16.mxu1 %v3566_v2 }
 0xdda   :  { %3229 = vmatpush3.bf16.msra.mxu1 %v3436_v6 }
 0xddb   :  { %3230 = vmatprep.subr.bf16.mxu1 %v3566_v2 }
 0xdde   :  { %3231 = vmatpush3.bf16.msra.mxu1 %v3437_v7 }
 0xddf   :  { %3232 = vmatprep.subr.bf16.mxu1 %v3566_v2 }
 0xde2   :  { %3233 = vmatpush3.bf16.msra.mxu1 %v3438_v9 }
 0xde3   :  { %3252 = vmatprep.subr.bf16.mxu1 %v3566_v2 }
 0xea8   :  { %v1300_v29 = vpop.f32.mrb[44].mxu1 }
 0xea9   :  { %v1301_v30 = vadd.f32 %v1300_v29, %v1250_v21  ;;  %v3216_v31 = vpop.f32.mrb[45].mxu1 }
 0xeaa   :  { %v1303_v32 = vpop.f32.mrb[46].mxu1 }
 0xeab   :  { %v1304_v34 = vadd.f32 %v1303_v32, %v1250_v21  ;;  %v3217_v35 = vpop.f32.mrb[47].mxu1  ;;  %v1307_v36 = vadd.f32 %v1301_v30, %v3723_v60 }
 0xead   :  { %v1309_v37 = vsel %vm168_vm4, %v1307_v36, 0.0  ;;  %v1308_v38 = vadd.f32 %v1304_v34, %v3725_v61  ;;  %v3433_v61 = vld [vmem:[%s4287_s7] sm:$0xff]  }
 0xeae   :  { %1310 = vadd.xlane.f32.xlu0 %v1309_v37  ;;  %3219 = vmatpush3.bf16.msra.mxu0 %v3433_v61 }
 0xeaf   :  { %v1312_v39 = vsel %vm168_vm4, %v1308_v38, 0.0  ;;  %3220 = vmatprep.subr.bf16.mxu0 %v3566_v2 }
 0xeb0   :  { %1313 = vadd.xlane.f32.xlu1 %v1312_v39 }
 0xeb2   :  { %3221 = vmatpush3.bf16.msra.mxu0 %v3434_v48 }
 0xeb3   :  { %3238 = vmatprep.subr.bf16.mxu0 %v3566_v2 }
 0xf3b   :  { %v1311_v40 = vpop.xlane.xlu0 %1310 }
 0xf3c   :  { %v1315_v41 = vmul.f32 0.03125, %v1311_v40 }
 0xf3d   :  { %v1314_v42 = vpop.xlane.xlu1 %1313 }
 0xf3e   :  { %v1317_v43 = vsub.f32 %v1307_v36, %v1315_v41  ;;  %v1316_v44 = vmul.f32 0.03125, %v1314_v42 }
 0xf40   :  { %v1318_v45 = vsub.f32 %v1308_v38, %v1316_v44  ;;  %v1319_v46 = vmul.f32 %v1317_v43, %v1317_v43 }
 0xf42   :  { %v1321_v8 = vsel %vm168_vm4, %v1319_v46, 0.0  ;;  %v1320_v47 = vmul.f32 %v1318_v45, %v1318_v45 }
 0xf43   :  { %1322 = vadd.xlane.f32.xlu0 %v1321_v8 }
 0xf44   :  { %v1324_v60 = vsel %vm168_vm4, %v1320_v47, 0.0 }
 0xf47   :  { %1325 = vadd.xlane.f32.xlu0 %v1324_v60 }
 0xfd0   :  { %v1323_v4 = vpop.xlane.xlu0 %1322 }
 0xfd1   :  { %v1327_v15 = vmul.f32 0.03125, %v1323_v4 }
 0xfd3   :  { %v1329_v20 = vadd.f32 1e-12, %v1327_v15 }
 0xfd4   :  { %v1326_v5 = vpop.xlane.xlu0 %1325 }
 0xfd5   :  { %3485 = vrsqrt.f32 %v1329_v20  ;;  %v1328_v49 = vmul.f32 0.03125, %v1326_v5 }
 0xfd7   :  { %v1330_v51 = vadd.f32 1e-12, %v1328_v49 }
 0xfd9   :  { %3487 = vrsqrt.f32 %v1330_v51 }
 0xfdf   :  { %v3486_v52 = vpop.eup %3485 }
 0xfe0   :  { %v1333_v55 = vmul.f32 %v3486_v52, %v1317_v43  ;;  %v1431_v43 = vsub.s32 3, %v3691_v17 }
 0xfe2   :  { %v1339_v57 = vmul.f32 %v1338_v54, %v1333_v55  ;;  %v1432_v44 = vrot.slane %v3937_v11, %v1431_v43 }
 0xfe3   :  { %v3488_v56 = vpop.eup %3487 }
 0xfe4   :  { %v1334_v58 = vmul.f32 %v3488_v56, %v1318_v45  ;;  %v1345_v63 = vadd.f32 %v1344_v59, %v1339_v57 }
 0xfe6   :  { %v1340_v62 = vmul.f32 %v1338_v54, %v1334_v58 }
 0xfe8   :  { %v1346_v0 = vadd.f32 %v1344_v59, %v1340_v62  ;;  %v3439_v62 = vld [vmem:[%s4284_s4 + $0x10] sm:$0xff]  }
 0xfea   :  { %v1347_v1 = vpack.c.bf16 %v1346_v0, %v1345_v63 }
 0xfec   :  { %3223 = vmatmul.mubr.msk.bf16.vlgmr.msra.gmra.mrb[28].mxu0 %vm168_vm4, %v1347_v1 }
 0xfed   :  { %3242 = vmatprep.mubr.msk.bf16.mxu0 %vm3567_vm0, %v3566_v2  ;;  %3239 = vmatpush3.bf16.msra.mxu0 %v3439_v62 }
 0xfee   :  { %3240 = vmatprep.subr.bf16.mxu0 %v3566_v2 }
0x10bf   :  { %v1403_v12 = vpop.f32.mrb[28].mxu0 }
0x10c0   :  { %v1404_v13 = vadd.f32 %v2915_v10, %v1403_v12  ;;  %v3224_v14 = vpop.f32.mrb[29].mxu0 }
0x10c1   :  { %v1406_v16 = vpop.f32.mrb[30].mxu0 }
0x10c2   :  { %v1412_v19 = vmul.f32 0.044715, %v1404_v13  ;;  %v1407_v22 = vadd.f32 %v2915_v10, %v1406_v16  ;;  %v3225_v23 = vpop.f32.mrb[31].mxu0  ;;  %v1410_v37 = vmul.f32 0.5, %v1404_v13  ;;  %v1532_v10 = vsub.s32 4, %v3691_v17 }
0x10c4   :  { %v1414_v24 = vmul.f32 %v1412_v19, %v1404_v13  ;;  %v1413_v26 = vmul.f32 0.044715, %v1407_v22  ;;  %v1411_v38 = vmul.f32 0.5, %v1407_v22  ;;  %v1533_v12 = vrot.slane %v3937_v11, %v1532_v10 }
0x10c6   :  { %v1416_v27 = vmul.f32 %v1414_v24, %v1404_v13  ;;  %v1415_v28 = vmul.f32 %v1413_v26, %v1407_v22 }
0x10c8   :  { %v1418_v21 = vadd.f32 %v1416_v27, %v1404_v13  ;;  %v1417_v29 = vmul.f32 %v1415_v28, %v1407_v22  ;;  %v1538_v13 = vsub.s32 5, %v3691_v17 }
0x10ca   :  { %v1420_v30 = vmul.f32 0.7978846, %v1418_v21  ;;  %v1419_v31 = vadd.f32 %v1417_v29, %v1407_v22  ;;  %v1539_v24 = vrot.slane %v3937_v11, %v1538_v13  ;;  %v2947_v29 = vld [vmem:[%s4285_s5 + $0x1] ss:$0 sm:$0xff] }
0x10cc   :  { %3489 = vtanh.f32 %v1420_v30  ;;  %v1421_v32 = vmul.f32 0.7978846, %v1419_v31 }
0x10ce   :  { %3491 = vtanh.f32 %v1421_v32 }
0x10d6   :  { %v3490_v34 = vpop.eup %3489 }
0x10d7   :  { %v1424_v35 = vadd.f32 1.0, %v3490_v34 }
0x10d8   :  { %v3492_v36 = vpop.eup %3491 }
0x10d9   :  { %v1425_v39 = vadd.f32 1.0, %v3492_v36  ;;  %v1426_v40 = vmul.f32 %v1424_v35, %v1410_v37 }
0x10db   :  { %v1427_v41 = vmul.f32 %v1425_v39, %v1411_v38 }
0x10dd   :  { %v1428_v42 = vpack.c.bf16 %v1427_v41, %v1426_v40 }
0x10df   :  { %3235 = vmatmul.mubr.msk.bf16.vlgmr.msra.gmra.mrb[48].mxu1 %vm1457_vm9, %v1428_v42 }
0x10e0   :  { %3254 = vmatprep.mubr.msk.bf16.mxu1 %vm3567_vm0, %v3566_v2 }
0x11b2   :  { %v1495_v45 = vpop.f32.mrb[48].mxu1 }
0x11b3   :  { %v1496_v46 = vadd.f32 %v1495_v45, %v1432_v44  ;;  %v3236_v8 = vpop.f32.mrb[49].mxu1 }
0x11b4   :  { %v1498_v47 = vpop.f32.mrb[50].mxu1 }
0x11b5   :  { %v1499_v60 = vadd.f32 %v1498_v47, %v1432_v44  ;;  %v3237_v61 = vpop.f32.mrb[51].mxu1  ;;  %v1502_v48 = vadd.f32 %v1496_v46, %v1345_v63  ;;  %v3440_v63 = vld [vmem:[%s4284_s4 + $0x18] sm:$0xff]  }
0x11b6   :  { %3241 = vmatpush3.bf16.msra.mxu0 %v3440_v63 }
0x11b7   :  { %v1504_v4 = vsel %vm168_vm4, %v1502_v48, 0.0  ;;  %v1503_v15 = vadd.f32 %v1499_v60, %v1346_v0  ;;  %3246 = vmatprep.subr.bf16.mxu0 %v3566_v2 }
0x11b8   :  { %1505 = vadd.xlane.f32.xlu1 %v1504_v4 }
0x11b9   :  { %v1507_v20 = vsel %vm168_vm4, %v1503_v15, 0.0 }
0x11ba   :  { %1508 = vadd.xlane.f32.xlu0 %v1507_v20 }
0x1245   :  { %v1506_v5 = vpop.xlane.xlu1 %1505 }
0x1246   :  { %v1510_v49 = vmul.f32 0.03125, %v1506_v5 }
0x1247   :  { %v1509_v51 = vpop.xlane.xlu0 %1508 }
0x1248   :  { %v1512_v52 = vsub.f32 %v1502_v48, %v1510_v49  ;;  %v1511_v54 = vmul.f32 0.03125, %v1509_v51 }
0x124a   :  { %v1513_v55 = vsub.f32 %v1503_v15, %v1511_v54  ;;  %v1514_v56 = vmul.f32 %v1512_v52, %v1512_v52 }
0x124c   :  { %v1516_v57 = vsel %vm168_vm4, %v1514_v56, 0.0  ;;  %v1515_v58 = vmul.f32 %v1513_v55, %v1513_v55 }
0x124d   :  { %1517 = vadd.xlane.f32.xlu1 %v1516_v57 }
0x124e   :  { %v1519_v59 = vsel %vm168_vm4, %v1515_v58, 0.0 }
0x124f   :  { %1520 = vadd.xlane.f32.xlu0 %v1519_v59 }
0x12da   :  { %v1518_v0 = vpop.xlane.xlu1 %1517 }
0x12db   :  { %v1522_v1 = vmul.f32 0.03125, %v1518_v0 }
0x12dc   :  { %v1521_v3 = vpop.xlane.xlu0 %1520 }
0x12dd   :  { %v1524_v6 = vadd.f32 1e-12, %v1522_v1  ;;  %v1523_v7 = vmul.f32 0.03125, %v1521_v3 }
0x12df   :  { %3493 = vrsqrt.f32 %v1524_v6  ;;  %v1525_v9 = vadd.f32 1e-12, %v1523_v7 }
0x12e1   :  { %3495 = vrsqrt.f32 %v1525_v9 }
0x12e9   :  { %v3494_v14 = vpop.eup %3493 }
0x12ea   :  { %v1528_v16 = vmul.f32 %v3494_v14, %v1512_v52 }
0x12eb   :  { %v3496_v19 = vpop.eup %3495 }
0x12ec   :  { %v1534_v22 = vmul.f32 %v1533_v12, %v1528_v16  ;;  %v1529_v23 = vmul.f32 %v3496_v19, %v1513_v55 }
0x12ee   :  { %v1535_v26 = vmul.f32 %v1533_v12, %v1529_v23  ;;  %v4008_v27 = vadd.f32 %v1539_v24, %v1534_v22 }
0x12f0   :  { %v4010_v28 = vadd.f32 %v1539_v24, %v1535_v26 }
0x12f2   :  { %v1572_v21 = vpack.c.bf16 %v4010_v28, %v4008_v27 }
0x12f4   :  { %3243 = vmatmul.mubr.msk.bf16.vlgmr.msra.gmra.mrb[32].mxu0 %vm168_vm4, %v1572_v21 }
0x12f5   :  { %3248 = vmatprep.mubr.msk.bf16.mxu0 %vm3567_vm0, %v3566_v2 }
0x13c7   :  { %v1628_v30 = vpop.f32.mrb[32].mxu0 }
0x13c8   :  { %v1629_v31 = vadd.f32 %v2947_v29, %v1628_v30  ;;  %v3244_v11 = vpop.f32.mrb[33].mxu0 }
0x13c9   :  { %v1631_v32 = vpop.f32.mrb[34].mxu0 }
0x13ca   :  { %v4020_v34 = vpack.c.bf16 %v1629_v31, %v1629_v31  ;;  %v1632_v35 = vadd.f32 %v2947_v29, %v1631_v32  ;;  %v3245_v36 = vpop.f32.mrb[35].mxu0 }
0x13cc   :  { %v4022_v37 = vpack.c.bf16 %v1632_v35, %v1632_v35  ;;  %1641 = vrot.lane.b32.xlu1 %v4020_v34, %s3569_s25 }
0x13ce   :  { %1689 = vrot.lane.b32.xlu0 %v4022_v37, %s3569_s25 }
0x143e   :  { %v1642_v38 = vpop.permute.xlu1 %1641 }
0x143f   :  { %v1647_v39 = vsel %vm338_vm5, %v1642_v38, 0 }
0x1440   :  { %3247 = vmatpush3.bf16.xpose.msra.mxu0 %v1647_v39  ;;  %v1690_v40 = vpop.permute.xlu0 %1689 }
0x1441   :  { %v1695_v41 = vsel %vm338_vm5, %v1690_v40, 0  ;;  %3258 = vmatprep.subr.bf16.mxu0 %v3566_v2 }
0x1442   :  { %3253 = vmatpush3.bf16.xpose.msra.mxu1 %v1695_v41 }
0x1443   :  { %3264 = vmatprep.subr.bf16.mxu1 %v3566_v2 }
0x1447   :  { %3249 = vmatmul.mubr.msk.bf16.vlgmr.msra.gmra.mrb[36].mxu0 %vm338_vm5, %v4020_v34 }
0x1448   :  { %3260 = vmatprep.mubr.msk.bf16.mxu0 %vm3567_vm0, %v3566_v2 }
0x1449   :  { %3255 = vmatmul.mubr.msk.bf16.vlgmr.msra.gmra.mrb[52].mxu1 %vm338_vm5, %v4022_v37 }
0x144a   :  { %3266 = vmatprep.mubr.msk.bf16.mxu1 %vm3567_vm0, %v3566_v2 }
0x151a   :  { %v1683_v42 = vpop.f32.mrb[36].mxu0 }
0x151b   :  { %v1684_v44 = vadd.f32 %v1683_v42, %v3760_v25  ;;  %v3250_v45 = vpop.f32.mrb[37].mxu0 }
0x151c   :  { %v1686_v46 = vpop.f32.mrb[38].mxu0  ;;  %v1731_v8 = vpop.f32.mrb[52].mxu1 }
0x151d   :  { %v1732_v47 = vadd.f32 %v1731_v8, %v3765_v33  ;;  %v3251_v60 = vpop.f32.mrb[39].mxu0  ;;  %v3256_v61 = vpop.f32.mrb[53].mxu1  ;;  %v1737_v48 = vsel %vm338_vm5, %v1684_v44, -inf }
0x151e   :  { %v1734_v4 = vpop.f32.mrb[54].mxu1  ;;  %1738 = vmax.xlane.f32.xlu1 %v1737_v48 }
0x151f   :  { %v3257_v15 = vpop.f32.mrb[55].mxu1  ;;  %v1740_v20 = vsel %vm338_vm5, %v1732_v47, -inf }
0x1520   :  { %1741 = vmax.xlane.f32.xlu0 %v1740_v20 }
0x152f   :  { %1761 = vrot.lane.b32.xlu1 %v4020_v34, %s3571_s1 }
0x15ab   :  { %v1739_v5 = vpop.xlane.xlu1 %1738 }
0x15ac   :  { %v1743_v49 = vsub.f32 %v1684_v44, %v1739_v5 }
0x15ad   :  { %v1742_v51 = vpop.xlane.xlu0 %1741 }
0x15ae   :  { %v1745_v52 = vmul.f32 1.442695, %v1743_v49  ;;  %v1744_v54 = vsub.f32 %v1732_v47, %v1742_v51 }
0x15af   :  { %v1762_v55 = vpop.permute.xlu1 %1761 }
0x15b0   :  { %3497 = vpow2.f32 %v1745_v52  ;;  %v1747_v56 = vmul.f32 1.442695, %v1744_v54  ;;  %v1767_v57 = vsel %vm462_vm6, %v1762_v55, 0 }
0x15b1   :  { %3259 = vmatpush3.bf16.msra.mxu0 %v1767_v57 }
0x15b2   :  { %3499 = vpow2.f32 %v1747_v56  ;;  %3270 = vmatprep.subr.bf16.mxu0 %v3566_v2 }
0x15ba   :  { %v3498_v58 = vpop.eup %3497 }
0x15bb   :  { %v1749_v59 = vsel %vm338_vm5, %v3498_v58, 0.0 }
0x15bc   :  { %v3500_v62 = vpop.eup %3499  ;;  %1750 = vadd.xlane.f32.xlu1 %v1749_v59 }
0x15bd   :  { %v1752_v63 = vsel %vm338_vm5, %v3500_v62, 0.0 }
0x15be   :  { %1753 = vadd.xlane.f32.xlu0 %v1752_v63 }
0x15cd   :  { %1859 = vrot.lane.b32.xlu1 %v4020_v34, %s3572_s27 }
0x15d1   :  { %1909 = vrot.lane.b32.xlu1 %v4022_v37, %s3572_s27 }
0x15d4   :  { %1809 = vrot.lane.b32.xlu0 %v4022_v37, %s3571_s1 }
0x15d5   :  { %1907 = vrot.lane.b32.xlu1 %v4022_v37, %s3573_s28 }
0x15d8   :  { %1857 = vrot.lane.b32.xlu0 %v4020_v34, %s3573_s28 }
0x1649   :  { %v1751_v0 = vpop.xlane.xlu1 %1750 }
0x164a   :  { %3501 = vrcp.f32 %v1751_v0 }
0x164b   :  { %v1754_v1 = vpop.xlane.xlu0 %1753 }
0x164c   :  { %3503 = vrcp.f32 %v1754_v1 }
0x164d   :  { %v1860_v7 = vpop.permute.xlu1 %1859 }
0x164e   :  { %v1865_v23 = vsel %vm338_vm5, %v1860_v7, 0 }
0x164f   :  { %v1810_v3 = vpop.permute.xlu0 %1809 }
0x1650   :  { %v1815_v6 = vsel %vm462_vm6, %v1810_v3, 0 }
0x1651   :  { %3265 = vmatpush3.bf16.msra.mxu1 %v1815_v6  ;;  %v1910_v22 = vpop.permute.xlu1 %1909 }
0x1652   :  { %3276 = vmatprep.subr.bf16.mxu1 %v3566_v2  ;;  %v1915_v26 = vsel %vm338_vm5, %v1910_v22, 0 }
0x1653   :  { %v1858_v21 = vpop.permute.xlu0 %1857 }
0x1654   :  { %v3502_v9 = vpop.eup %3501 }
0x1655   :  { %v1757_v12 = vmul.f32 %v3502_v9, %v3498_v58  ;;  %v1908_v29 = vpop.permute.xlu1 %1907 }
0x1656   :  { %v3504_v14 = vpop.eup %3503 }
0x1657   :  { %v1758_v16 = vmul.f32 %v3504_v14, %v3500_v62  ;;  %v1759_v19 = vpack.c.bf16 %v1757_v12, %v1757_v12 }
0x1659   :  { %3261 = vmatmul.mubr.msk.bf16.vlgmr.msra.gmra.mrb[40].mxu0 %vm338_vm5, %v1759_v19  ;;  %v1760_v24 = vpack.c.bf16 %v1758_v16, %v1758_v16 }
0x165a   :  { %3271 = vmatpush3.bf16.xpose.msra.mxu0 %v1865_v23  ;;  %3272 = vmatprep.mubr.msk.bf16.mxu0 %vm3567_vm0, %v3566_v2 }
0x165b   :  { %3267 = vmatmul.mubr.msk.bf16.vlgmr.msra.gmra.mrb[56].mxu1 %vm338_vm5, %v1760_v24  ;;  %3282 = vmatprep.subr.bf16.mxu0 %v3566_v2 }
0x165c   :  { %3277 = vmatpush3.bf16.xpose.msra.mxu1 %v1915_v26  ;;  %3278 = vmatprep.mubr.msk.bf16.mxu1 %vm3567_vm0, %v3566_v2 }
0x165d   :  { %3288 = vmatprep.subr.bf16.mxu1 %v3566_v2 }
0x1661   :  { %3273 = vmatmul.mubr.msk.bf16.vlgmr.msra.gmra.mrb[44].mxu0 %vm338_vm5, %v1858_v21 }
0x1662   :  { %3284 = vmatprep.mubr.msk.bf16.mxu0 %vm3567_vm0, %v3566_v2 }
0x1663   :  { %3279 = vmatmul.mubr.msk.bf16.vlgmr.msra.gmra.mrb[60].mxu1 %vm338_vm5, %v1908_v29 }
0x1664   :  { %3290 = vmatprep.mubr.msk.bf16.mxu1 %vm3567_vm0, %v3566_v2 }
0x172c   :  { %v4078_v30 = vpop.f32.mrb[40].mxu0 }
0x172d   :  { %v3262_v31 = vpop.f32.mrb[41].mxu0 }
0x172e   :  { %v1806_v11 = vpop.f32.mrb[42].mxu0  ;;  %v4080_v32 = vpop.f32.mrb[56].mxu1 }
0x172f   :  { %v3263_v35 = vpop.f32.mrb[43].mxu0  ;;  %v3268_v36 = vpop.f32.mrb[57].mxu1 }
0x1730   :  { %v1854_v38 = vpop.f32.mrb[58].mxu1 }
0x1731   :  { %v3269_v39 = vpop.f32.mrb[59].mxu1 }
0x1734   :  { %v1901_v40 = vpop.f32.mrb[44].mxu0 }
0x1735   :  { %v1902_v41 = vadd.f32 %v1901_v40, %v3760_v25  ;;  %v3274_v42 = vpop.f32.mrb[45].mxu0 }
0x1736   :  { %v1904_v44 = vpop.f32.mrb[46].mxu0  ;;  %v1951_v45 = vpop.f32.mrb[60].mxu1 }
0x1737   :  { %v1952_v46 = vadd.f32 %v1951_v45, %v3765_v33  ;;  %v3275_v8 = vpop.f32.mrb[47].mxu0  ;;  %v3280_v47 = vpop.f32.mrb[61].mxu1  ;;  %v1957_v60 = vsel %vm338_vm5, %v1902_v41, -inf }
0x1738   :  { %v1954_v61 = vpop.f32.mrb[62].mxu1  ;;  %1958 = vmax.xlane.f32.xlu0 %v1957_v60 }
0x1739   :  { %v3281_v48 = vpop.f32.mrb[63].mxu1  ;;  %v1960_v4 = vsel %vm338_vm5, %v1952_v46, -inf }
0x173a   :  { %1961 = vmax.xlane.f32.xlu1 %v1960_v4 }
0x174b   :  { %1981 = vrot.lane.b32.xlu1 %v4020_v34, %s3574_s29 }
0x174f   :  { %2079 = vrot.lane.b32.xlu1 %v4020_v34, %s3575_s30 }
0x1753   :  { %2129 = vrot.lane.b32.xlu1 %v4022_v37, %s3575_s30 }
0x1757   :  { %2127 = vrot.lane.b32.xlu1 %v4022_v37, %s3576_s12 }
0x17c5   :  { %v1959_v15 = vpop.xlane.xlu0 %1958 }
0x17c6   :  { %v1963_v20 = vsub.f32 %v1902_v41, %v1959_v15 }
0x17c7   :  { %v1962_v5 = vpop.xlane.xlu1 %1961 }
0x17c8   :  { %v1965_v49 = vmul.f32 1.442695, %v1963_v20  ;;  %v1964_v51 = vsub.f32 %v1952_v46, %v1962_v5 }
0x17ca   :  { %3505 = vpow2.f32 %v1965_v49  ;;  %v1967_v52 = vmul.f32 1.442695, %v1964_v51 }
0x17cb   :  { %v1982_v54 = vpop.permute.xlu1 %1981 }
0x17cc   :  { %3507 = vpow2.f32 %v1967_v52  ;;  %v1987_v55 = vsel %vm462_vm6, %v1982_v54, 0 }
0x17cd   :  { %3283 = vmatpush3.bf16.msra.mxu0 %v1987_v55 }
0x17ce   :  { %3294 = vmatprep.subr.bf16.mxu0 %v3566_v2 }
0x17cf   :  { %v2080_v6 = vpop.permute.xlu1 %2079 }
0x17d0   :  { %v2085_v14 = vsel %vm338_vm5, %v2080_v6, 0 }
0x17d3   :  { %v2130_v19 = vpop.permute.xlu1 %2129 }
0x17d4   :  { %v3506_v56 = vpop.eup %3505  ;;  %v2135_v23 = vsel %vm338_vm5, %v2130_v19, 0 }
0x17d5   :  { %v1969_v57 = vsel %vm338_vm5, %v3506_v56, 0.0 }
0x17d6   :  { %v3508_v58 = vpop.eup %3507  ;;  %1970 = vadd.xlane.f32.xlu0 %v1969_v57 }
0x17d7   :  { %v1972_v59 = vsel %vm338_vm5, %v3508_v58, 0.0  ;;  %v2128_v26 = vpop.permute.xlu1 %2127 }
0x17da   :  { %1973 = vadd.xlane.f32.xlu0 %v1972_v59 }
0x17f0   :  { %2029 = vrot.lane.b32.xlu0 %v4022_v37, %s3574_s29 }
0x17f4   :  { %2077 = vrot.lane.b32.xlu0 %v4020_v34, %s3576_s12 }
0x1863   :  { %v1971_v62 = vpop.xlane.xlu0 %1970 }
0x1864   :  { %3509 = vrcp.f32 %v1971_v62 }
0x1867   :  { %v1974_v63 = vpop.xlane.xlu0 %1973 }
0x1868   :  { %3511 = vrcp.f32 %v1974_v63 }
0x186b   :  { %v2030_v0 = vpop.permute.xlu0 %2029 }
0x186c   :  { %v2035_v1 = vsel %vm462_vm6, %v2030_v0, 0 }
0x186d   :  { %3289 = vmatpush3.bf16.msra.mxu1 %v2035_v1 }
0x186e   :  { %v3510_v3 = vpop.eup %3509  ;;  %3300 = vmatprep.subr.bf16.mxu1 %v3566_v2 }
0x186f   :  { %v1977_v7 = vmul.f32 %v3510_v3, %v3506_v56  ;;  %v2078_v24 = vpop.permute.xlu0 %2077 }
0x1871   :  { %v1979_v9 = vpack.c.bf16 %v1977_v7, %v1977_v7 }
0x1872   :  { %v3512_v12 = vpop.eup %3511 }
0x1873   :  { %v1978_v16 = vmul.f32 %v3512_v12, %v3508_v58  ;;  %3285 = vmatmul.mubr.msk.bf16.vlgmr.msra.gmra.mrb[48].mxu0 %vm338_vm5, %v1979_v9 }
0x1874   :  { %3295 = vmatpush3.bf16.xpose.msra.mxu0 %v2085_v14  ;;  %3296 = vmatprep.mubr.msk.bf16.mxu0 %vm3567_vm0, %v3566_v2 }
0x1875   :  { %v1980_v22 = vpack.c.bf16 %v1978_v16, %v1978_v16  ;;  %3306 = vmatprep.subr.bf16.mxu0 %v3566_v2 }
0x1877   :  { %3291 = vmatmul.mubr.msk.bf16.vlgmr.msra.gmra.mrb[64].mxu1 %vm338_vm5, %v1980_v22 }
0x1878   :  { %3301 = vmatpush3.bf16.xpose.msra.mxu1 %v2135_v23  ;;  %3302 = vmatprep.mubr.msk.bf16.mxu1 %vm3567_vm0, %v3566_v2 }
0x1879   :  { %3312 = vmatprep.subr.bf16.mxu1 %v3566_v2 }
0x187b   :  { %3297 = vmatmul.mubr.msk.bf16.vlgmr.msra.gmra.mrb[52].mxu0 %vm338_vm5, %v2078_v24 }
0x187c   :  { %3308 = vmatprep.mubr.msk.bf16.mxu0 %vm3567_vm0, %v3566_v2 }
0x187f   :  { %3303 = vmatmul.mubr.msk.bf16.vlgmr.msra.gmra.mrb[68].mxu1 %vm338_vm5, %v2128_v26 }
0x1880   :  { %3314 = vmatprep.mubr.msk.bf16.mxu1 %vm3567_vm0, %v3566_v2 }
0x1946   :  { %v4120_v21 = vpop.f32.mrb[48].mxu0 }
0x1947   :  { %v3286_v29 = vpop.f32.mrb[49].mxu0 }
0x1948   :  { %v2026_v31 = vpop.f32.mrb[50].mxu0 }
0x1949   :  { %v3287_v11 = vpop.f32.mrb[51].mxu0 }
0x194a   :  { %v4122_v35 = vpop.f32.mrb[64].mxu1 }
0x194b   :  { %v3406_v36 = vpack.i.bf16 %v4122_v35, %v4120_v21  ;;  %v3292_v38 = vpop.f32.mrb[65].mxu1 }
0x194c   :  { %v2074_v39 = vpop.f32.mrb[66].mxu1 }
0x194d   :  { %v3293_v40 = vpop.f32.mrb[67].mxu1 }
0x194e   :  { %v2121_v41 = vpop.f32.mrb[52].mxu0 }
0x194f   :  { %v2122_v42 = vadd.f32 %v2121_v41, %v3760_v25  ;;  %v3298_v44 = vpop.f32.mrb[53].mxu0 }
0x1950   :  { %v2124_v45 = vpop.f32.mrb[54].mxu0 }
0x1951   :  { %v3299_v46 = vpop.f32.mrb[55].mxu0  ;;  %v2177_v8 = vsel %vm338_vm5, %v2122_v42, -inf }
0x1952   :  { %v2171_v47 = vpop.f32.mrb[68].mxu1  ;;  %2178 = vmax.xlane.f32.xlu0 %v2177_v8 }
0x1953   :  { %v2172_v60 = vadd.f32 %v2171_v47, %v3765_v33  ;;  %v3304_v61 = vpop.f32.mrb[69].mxu1 }
0x1954   :  { %v2174_v48 = vpop.f32.mrb[70].mxu1 }
0x1955   :  { %v3305_v4 = vpop.f32.mrb[71].mxu1  ;;  %v2180_v15 = vsel %vm338_vm5, %v2172_v60, -inf }
0x1956   :  { %2181 = vmax.xlane.f32.xlu1 %v2180_v15 }
0x1967   :  { %2201 = vrot.lane.b32.xlu1 %v4020_v34, %s3577_s13 }
0x196b   :  { %2299 = vrot.lane.b32.xlu1 %v4020_v34, %s3578_s14 }
0x196f   :  { %2349 = vrot.lane.b32.xlu1 %v4022_v37, %s3578_s14 }
0x1973   :  { %2347 = vrot.lane.b32.xlu1 %v4022_v37, %s3579_s15 }
0x19df   :  { %v2179_v20 = vpop.xlane.xlu0 %2178 }
0x19e0   :  { %v2183_v5 = vsub.f32 %v2122_v42, %v2179_v20 }
0x19e2   :  { %v2185_v49 = vmul.f32 1.442695, %v2183_v5 }
0x19e3   :  { %v2182_v51 = vpop.xlane.xlu1 %2181 }
0x19e4   :  { %3513 = vpow2.f32 %v2185_v49  ;;  %v2184_v52 = vsub.f32 %v2172_v60, %v2182_v51 }
0x19e6   :  { %v2187_v54 = vmul.f32 1.442695, %v2184_v52 }
0x19e7   :  { %v2202_v55 = vpop.permute.xlu1 %2201 }
0x19e8   :  { %3515 = vpow2.f32 %v2187_v54  ;;  %v2207_v56 = vsel %vm462_vm6, %v2202_v55, 0 }
0x19e9   :  { %3307 = vmatpush3.bf16.msra.mxu0 %v2207_v56 }
0x19ea   :  { %3318 = vmatprep.subr.bf16.mxu0 %v3566_v2 }
0x19eb   :  { %v2300_v7 = vpop.permute.xlu1 %2299 }
0x19ec   :  { %v2305_v16 = vsel %vm338_vm5, %v2300_v7, 0 }
0x19ee   :  { %v3514_v57 = vpop.eup %3513 }
0x19ef   :  { %v2189_v58 = vsel %vm338_vm5, %v3514_v57, 0.0  ;;  %v2350_v22 = vpop.permute.xlu1 %2349 }
0x19f0   :  { %2190 = vadd.xlane.f32.xlu0 %v2189_v58  ;;  %v2355_v24 = vsel %vm338_vm5, %v2350_v22, 0 }
0x19f2   :  { %v3516_v59 = vpop.eup %3515 }
0x19f3   :  { %v2192_v62 = vsel %vm338_vm5, %v3516_v59, 0.0  ;;  %v2348_v29 = vpop.permute.xlu1 %2347 }
0x19f4   :  { %2193 = vadd.xlane.f32.xlu0 %v2192_v62 }
0x1a0a   :  { %2249 = vrot.lane.b32.xlu0 %v4022_v37, %s3577_s13 }
0x1a0e   :  { %2297 = vrot.lane.b32.xlu0 %v4020_v34, %s3579_s15 }
0x1a7d   :  { %v2191_v63 = vpop.xlane.xlu0 %2190 }
0x1a7e   :  { %3517 = vrcp.f32 %v2191_v63 }
0x1a81   :  { %v2194_v0 = vpop.xlane.xlu0 %2193 }
0x1a82   :  { %3519 = vrcp.f32 %v2194_v0 }
0x1a85   :  { %v2250_v1 = vpop.permute.xlu0 %2249 }
0x1a86   :  { %v2255_v3 = vsel %vm462_vm6, %v2250_v1, 0 }
0x1a87   :  { %3313 = vmatpush3.bf16.msra.mxu1 %v2255_v3 }
0x1a88   :  { %v3518_v6 = vpop.eup %3517  ;;  %3324 = vmatprep.subr.bf16.mxu1 %v3566_v2 }
0x1a89   :  { %v2197_v9 = vmul.f32 %v3518_v6, %v3514_v57  ;;  %v2298_v26 = vpop.permute.xlu0 %2297 }
0x1a8b   :  { %v2199_v12 = vpack.c.bf16 %v2197_v9, %v2197_v9 }
0x1a8c   :  { %v3520_v14 = vpop.eup %3519 }
0x1a8d   :  { %v2198_v19 = vmul.f32 %v3520_v14, %v3516_v59  ;;  %3309 = vmatmul.mubr.msk.bf16.vlgmr.msra.gmra.mrb[56].mxu0 %vm338_vm5, %v2199_v12  ;;  %v3441_v12 = vld [vmem:[%s4286_s6 + $0x10] sm:$0xff]   ;;  %v3442_v14 = vld [vmem:[%s4286_s6 + $0x18] sm:$0xff]  }
0x1a8e   :  { %3319 = vmatpush3.bf16.xpose.msra.mxu0 %v2305_v16  ;;  %3320 = vmatprep.mubr.msk.bf16.mxu0 %vm3567_vm0, %v3566_v2 }
0x1a8f   :  { %v2200_v23 = vpack.c.bf16 %v2198_v19, %v2198_v19  ;;  %3330 = vmatprep.subr.bf16.mxu0 %v3566_v2 }
0x1a91   :  { %3315 = vmatmul.mubr.msk.bf16.vlgmr.msra.gmra.mrb[72].mxu1 %vm338_vm5, %v2200_v23 }
0x1a92   :  { %3325 = vmatpush3.bf16.xpose.msra.mxu1 %v2355_v24  ;;  %3326 = vmatprep.mubr.msk.bf16.mxu1 %vm3567_vm0, %v3566_v2 }
0x1a93   :  { %3336 = vmatprep.subr.bf16.mxu1 %v3566_v2 }
0x1a95   :  { %3321 = vmatmul.mubr.msk.bf16.vlgmr.msra.gmra.mrb[60].mxu0 %vm338_vm5, %v2298_v26 }
0x1a96   :  { %3332 = vmatprep.mubr.msk.bf16.mxu0 %vm3567_vm0, %v3566_v2 }
0x1a99   :  { %3327 = vmatmul.mubr.msk.bf16.vlgmr.msra.gmra.mrb[76].mxu1 %vm338_vm5, %v2348_v29 }
0x1a9a   :  { %3338 = vmatprep.mubr.msk.bf16.mxu1 %vm3567_vm0, %v3566_v2 }
0x1b60   :  { %v2243_v31 = vpop.f32.mrb[56].mxu0 }
0x1b61   :  { %v3310_v11 = vpop.f32.mrb[57].mxu0 }
0x1b62   :  { %v2246_v38 = vpop.f32.mrb[58].mxu0 }
0x1b63   :  { %v3311_v39 = vpop.f32.mrb[59].mxu0 }
0x1b64   :  { %v2291_v40 = vpop.f32.mrb[72].mxu1 }
0x1b65   :  { %v3411_v41 = vpack.i.bf16 %v2291_v40, %v2243_v31  ;;  %v3316_v42 = vpop.f32.mrb[73].mxu1 }
0x1b66   :  { %v2294_v44 = vpop.f32.mrb[74].mxu1 }
0x1b67   :  { %v3317_v45 = vpop.f32.mrb[75].mxu1 }
0x1b68   :  { %v2341_v46 = vpop.f32.mrb[60].mxu0 }
0x1b69   :  { %v2342_v8 = vadd.f32 %v2341_v46, %v3760_v25  ;;  %v3322_v47 = vpop.f32.mrb[61].mxu0 }
0x1b6a   :  { %v2344_v60 = vpop.f32.mrb[62].mxu0 }
0x1b6b   :  { %v3323_v61 = vpop.f32.mrb[63].mxu0  ;;  %v2397_v48 = vsel %vm338_vm5, %v2342_v8, -inf }
0x1b6c   :  { %v2391_v4 = vpop.f32.mrb[76].mxu1  ;;  %2398 = vmax.xlane.f32.xlu0 %v2397_v48 }
0x1b6d   :  { %v2392_v15 = vadd.f32 %v2391_v4, %v3765_v33  ;;  %v3328_v20 = vpop.f32.mrb[77].mxu1 }
0x1b6e   :  { %v2394_v5 = vpop.f32.mrb[78].mxu1 }
0x1b6f   :  { %v3329_v49 = vpop.f32.mrb[79].mxu1  ;;  %v2400_v51 = vsel %vm338_vm5, %v2392_v15, -inf }
0x1b70   :  { %2401 = vmax.xlane.f32.xlu1 %v2400_v51 }
0x1b81   :  { %2421 = vrot.lane.b32.xlu1 %v4020_v34, %s3580_s16 }
0x1b85   :  { %3407 = vrot.lane.b32.xlu1 %v3406_v36, %s3581_s2 }
0x1b89   :  { %3412 = vrot.lane.b32.xlu1 %v3411_v41, %s3582_s17 }
0x1bf9   :  { %v2399_v25 = vpop.xlane.xlu0 %2398 }
0x1bfa   :  { %v2403_v52 = vsub.f32 %v2342_v8, %v2399_v25 }
0x1bfc   :  { %v2405_v54 = vmul.f32 1.442695, %v2403_v52 }
0x1bfd   :  { %v2402_v33 = vpop.xlane.xlu1 %2401 }
0x1bfe   :  { %3521 = vpow2.f32 %v2405_v54  ;;  %v2404_v55 = vsub.f32 %v2392_v15, %v2402_v33 }
0x1c00   :  { %v2407_v56 = vmul.f32 1.442695, %v2404_v55 }
0x1c01   :  { %v2422_v57 = vpop.permute.xlu1 %2421 }
0x1c02   :  { %3523 = vpow2.f32 %v2407_v56  ;;  %v2427_v58 = vsel %vm462_vm6, %v2422_v57, 0 }
0x1c03   :  { %3331 = vmatpush3.bf16.msra.mxu0 %v2427_v58 }
0x1c04   :  { %3342 = vmatprep.subr.bf16.mxu0 %v3566_v2 }
0x1c05   :  { %v3408_v38 = vpop.permute.xlu1 %3407 }
0x1c06   :  { %v3410_v40 = vunpack.i.h.bf16 %v3408_v38  ;;  %v3409_v41 = vunpack.i.l.bf16 %v3408_v38  ;;  %v3445_v38 = vld [vmem:[%s4289_s9 + $0x20] sm:$0xff]  }
0x1c08   :  { %v3522_v34 = vpop.eup %3521  ;;  %v2542_v46 = vsel %vm338_vm5, %v4080_v32, %v3410_v40  ;;  %v2541_v8 = vsel %vm338_vm5, %v4078_v30, %v3409_v41  ;;  %v4212_v30 = vld [vmem:[%s4290_s10 + $0x8] sm:$0x3f]  ;;  %v2972_v40 = vld [vmem:[%s4288_s8 + $0x1] ss:$0 sm:$0xff]  ;;  %s3584_s8 = smov [#allocation2]  }
0x1c09   :  { %v2409_v21 = vsel %vm338_vm5, %v3522_v34, 0.0  ;;  %v3413_v39 = vpop.permute.xlu1 %3412  ;;  %v2551_v32 = vrot.slane %v4212_v30, %v3694_v18 }
0x1c0a   :  { %2410 = vadd.xlane.f32.xlu0 %v2409_v21  ;;  %v3415_v42 = vunpack.i.h.bf16 %v3413_v39  ;;  %v3414_v44 = vunpack.i.l.bf16 %v3413_v39  ;;  %v3448_v39 = vld [vmem:[%s4289_s9 + $0x38] sm:$0xff]  }
0x1c0c   :  { %v3524_v35 = vpop.eup %3523  ;;  %v2544_v61 = vsel %vm1240_vm7, %v2542_v46, %v3415_v42  ;;  %v2543_v48 = vsel %vm1240_vm7, %v2541_v8, %v3414_v44 }
0x1c0d   :  { %v2412_v36 = vsel %vm338_vm5, %v3524_v35, 0.0 }
0x1c0e   :  { %2413 = vadd.xlane.f32.xlu0 %v2412_v36 }
0x1c24   :  { %2469 = vrot.lane.b32.xlu0 %v4022_v37, %s3580_s16 }
0x1c97   :  { %v2411_v59 = vpop.xlane.xlu0 %2410 }
0x1c98   :  { %3525 = vrcp.f32 %v2411_v59 }
0x1c9b   :  { %v2414_v62 = vpop.xlane.xlu0 %2413 }
0x1c9c   :  { %3527 = vrcp.f32 %v2414_v62 }
0x1c9f   :  { %v2470_v63 = vpop.permute.xlu0 %2469 }
0x1ca0   :  { %v2475_v0 = vsel %vm462_vm6, %v2470_v63, 0 }
0x1ca1   :  { %3337 = vmatpush3.bf16.msra.mxu1 %v2475_v0  ;;  %v3444_v0 = vld [vmem:[%s4287_s7 + $0x18] sm:$0xff]  }
0x1ca2   :  { %v3526_v1 = vpop.eup %3525  ;;  %3350 = vmatprep.subr.bf16.mxu1 %v3566_v2 }
0x1ca3   :  { %v2417_v3 = vmul.f32 %v3526_v1, %v3522_v34 }
0x1ca5   :  { %v2419_v6 = vpack.c.bf16 %v2417_v3, %v2417_v3 }
0x1ca6   :  { %v3528_v7 = vpop.eup %3527 }
0x1ca7   :  { %v2418_v9 = vmul.f32 %v3528_v7, %v3524_v35  ;;  %3333 = vmatmul.mubr.msk.bf16.vlgmr.msra.gmra.mrb[64].mxu0 %vm338_vm5, %v2419_v6 }
0x1ca8   :  { %3346 = vmatprep.mubr.msk.bf16.mxu0 %vm3567_vm0, %v3566_v2  ;;  %3343 = vmatpush3.bf16.msra.mxu0 %v3441_v12  ;;  %v2639_v12 = vrot.slane %v4212_v30, %v3716_v50  ;;  %v3446_v50 = vld [vmem:[%s4289_s9 + $0x28] sm:$0xff]  }
0x1ca9   :  { %v2420_v37 = vpack.c.bf16 %v2418_v9, %v2418_v9  ;;  %3344 = vmatprep.subr.bf16.mxu0 %v3566_v2 }
0x1cab   :  { %3339 = vmatmul.mubr.msk.bf16.vlgmr.msra.gmra.mrb[80].mxu1 %vm338_vm5, %v2420_v37 }
0x1cac   :  { %3354 = vmatprep.mubr.msk.bf16.mxu1 %vm3567_vm0, %v3566_v2  ;;  %3345 = vmatpush3.bf16.msra.mxu0 %v3442_v14 }
0x1cad   :  { %3358 = vmatprep.subr.bf16.mxu0 %v3566_v2 }
0x1d7a   :  { %v2463_v16 = vpop.f32.mrb[64].mxu0 }
0x1d7b   :  { %v3334_v19 = vpop.f32.mrb[65].mxu0 }
0x1d7c   :  { %v2466_v22 = vpop.f32.mrb[66].mxu0 }
0x1d7d   :  { %v3335_v23 = vpop.f32.mrb[67].mxu0 }
0x1d7e   :  { %v2511_v24 = vpop.f32.mrb[80].mxu1 }
0x1d7f   :  { %v3416_v26 = vpack.i.bf16 %v2511_v24, %v2463_v16  ;;  %v3340_v29 = vpop.f32.mrb[81].mxu1  ;;  %v2645_v24 = vrot.slane %v4212_v30, %v3720_v53  ;;  %v3447_v53 = vld [vmem:[%s4289_s9 + $0x30] sm:$0xff]   ;;  %s2872_s9 = sshll.u32 %s3584_s8, 4  ;;  %s2873_s9 = int_to_ptr.vmem [resolvable:$true] %s2872_s9 }
0x1d80   :  { %v2514_v31 = vpop.f32.mrb[82].mxu1  ;;  %s3541_s18 = scalar_lea.vmem %s2873_s9, 32  ;;  %p3546_p1 = scmp.lt.s32.totalorder %s2873_s9, %s2873_s9 }
0x1d81   :  { %v3341_v11 = vpop.f32.mrb[83].mxu1  ;;  %3417 = vrot.lane.b32.xlu0 %v3416_v26, %s3583_s21  ;;  %p3542_p0 = scmp.ne.s32.totalorder %s2873_s9, %s3541_s18  ;;  %p3547_p2 = scmp.lt.s32.totalorder %s3541_s18, %s3541_s18 }
0x1d83   :  { %p3548_p3 = por %p3547_p2, %p3546_p1 }
0x1d85   :  { %p3549_p4 = pnand %p3548_p3, %p3542_p0 }
0x1df3   :  { %v3418_v45 = vpop.permute.xlu0 %3417 }
0x1df4   :  { %v3420_v47 = vunpack.i.h.bf16 %v3418_v45  ;;  %v3419_v60 = vunpack.i.l.bf16 %v3418_v45 }
0x1df6   :  { %v2546_v4 = vsel %vm1243_vm8, %v2544_v61, %v3420_v47  ;;  %v2545_v15 = vsel %vm1243_vm8, %v2543_v48, %v3419_v60 }
0x1df7   :  { %v2547_v20 = vpack.c.bf16 %v2546_v4, %v2545_v15 }
0x1df9   :  { %3347 = vmatmul.mubr.msk.bf16.vlgmr.msra.gmra.mrb[68].mxu0 %vm168_vm4, %v2547_v20 }
0x1dfa   :  { %3366 = vmatprep.mubr.msk.bf16.mxu0 %vm3567_vm0, %v3566_v2  ;;  %3359 = vmatpush3.bf16.msra.mxu0 %v3445_v38  ;;  %v2839_v38 = vrot.slane %v4212_v30, %v1538_v13 }
0x1dfb   :  { %3360 = vmatprep.subr.bf16.mxu0 %v3566_v2 }
0x1dfe   :  { %3361 = vmatpush3.bf16.msra.mxu0 %v3446_v50 }
0x1dff   :  { %3362 = vmatprep.subr.bf16.mxu0 %v3566_v2 }
0x1e02   :  { %3363 = vmatpush3.bf16.msra.mxu0 %v3447_v53 }
0x1e03   :  { %3364 = vmatprep.subr.bf16.mxu0 %v3566_v2 }
0x1e06   :  { %3365 = vmatpush3.bf16.msra.mxu0 %v3448_v39 }
0x1ecc   :  { %v2601_v5 = vpop.f32.mrb[68].mxu0 }
0x1ecd   :  { %v2602_v49 = vadd.f32 %v2601_v5, %v2551_v32  ;;  %v3348_v51 = vpop.f32.mrb[69].mxu0 }
0x1ece   :  { %v2604_v25 = vpop.f32.mrb[70].mxu0 }
0x1ecf   :  { %v2605_v52 = vadd.f32 %v2604_v25, %v2551_v32  ;;  %v3349_v54 = vpop.f32.mrb[71].mxu0  ;;  %v2608_v33 = vadd.f32 %v2602_v49, %v4008_v27 }
0x1ed1   :  { %v2609_v55 = vadd.f32 %v2605_v52, %v4010_v28  ;;  %v2610_v56 = vsel %vm168_vm4, %v2608_v33, 0.0  ;;  %v3443_v28 = vld [vmem:[%s4287_s7 + $0x10] sm:$0xff]  }
0x1ed2   :  { %2611 = vadd.xlane.f32.xlu1 %v2610_v56  ;;  %3351 = vmatpush3.bf16.msra.mxu1 %v3443_v28 }
0x1ed3   :  { %v2613_v57 = vsel %vm168_vm4, %v2609_v55, 0.0  ;;  %3352 = vmatprep.subr.bf16.mxu1 %v3566_v2 }
0x1ed4   :  { %2614 = vadd.xlane.f32.xlu0 %v2613_v57 }
0x1ed6   :  { %3353 = vmatpush3.bf16.msra.mxu1 %v3444_v0 }
0x1f5f   :  { %v2612_v58 = vpop.xlane.xlu1 %2611 }
0x1f60   :  { %v2616_v34 = vmul.f32 0.03125, %v2612_v58  ;;  %v2733_v58 = vrot.slane %v4212_v30, %v1431_v43 }
0x1f61   :  { %v2615_v21 = vpop.xlane.xlu0 %2614 }
0x1f62   :  { %v2618_v18 = vsub.f32 %v2608_v33, %v2616_v34  ;;  %v2617_v35 = vmul.f32 0.03125, %v2615_v21 }
0x1f64   :  { %v2619_v36 = vsub.f32 %v2609_v55, %v2617_v35  ;;  %v2620_v59 = vmul.f32 %v2618_v18, %v2618_v18 }
0x1f66   :  { %v2622_v62 = vsel %vm168_vm4, %v2620_v59, 0.0  ;;  %v2621_v63 = vmul.f32 %v2619_v36, %v2619_v36 }
0x1f67   :  { %2623 = vadd.xlane.f32.xlu0 %v2622_v62 }
0x1f68   :  { %v2625_v27 = vsel %vm168_vm4, %v2621_v63, 0.0 }
0x1f69   :  { %2626 = vadd.xlane.f32.xlu1 %v2625_v27 }
0x1ff4   :  { %v2624_v1 = vpop.xlane.xlu0 %2623 }
0x1ff5   :  { %v2628_v3 = vmul.f32 0.03125, %v2624_v1 }
0x1ff6   :  { %v2627_v6 = vpop.xlane.xlu1 %2626 }
0x1ff7   :  { %v2630_v7 = vadd.f32 1e-12, %v2628_v3  ;;  %v2629_v9 = vmul.f32 0.03125, %v2627_v6 }
0x1ff9   :  { %3529 = vrsqrt.f32 %v2630_v7  ;;  %v2631_v37 = vadd.f32 1e-12, %v2629_v9 }
0x1ffb   :  { %3531 = vrsqrt.f32 %v2631_v37 }
0x2003   :  { %v3530_v14 = vpop.eup %3529 }
0x2004   :  { %v2634_v16 = vmul.f32 %v3530_v14, %v2618_v18 }
0x2005   :  { %v3532_v19 = vpop.eup %3531 }
0x2006   :  { %v2640_v22 = vmul.f32 %v2639_v12, %v2634_v16  ;;  %v2635_v23 = vmul.f32 %v3532_v19, %v2619_v36 }
0x2008   :  { %v2641_v26 = vmul.f32 %v2639_v12, %v2635_v23  ;;  %v2646_v29 = vadd.f32 %v2645_v24, %v2640_v22 }
0x200a   :  { %v2647_v31 = vadd.f32 %v2645_v24, %v2641_v26 }
0x200c   :  { %v2648_v11 = vpack.c.bf16 %v2647_v31, %v2646_v29 }
0x200e   :  { %3355 = vmatmul.mubr.msk.bf16.vlgmr.msra.gmra.mrb[84].mxu1 %vm168_vm4, %v2648_v11 }
0x20e1   :  { %v2704_v41 = vpop.f32.mrb[84].mxu1 }
0x20e2   :  { %v2705_v42 = vadd.f32 %v2972_v40, %v2704_v41  ;;  %v3356_v44 = vpop.f32.mrb[85].mxu1 }
0x20e3   :  { %v2707_v45 = vpop.f32.mrb[86].mxu1 }
0x20e4   :  { %v2713_v46 = vmul.f32 0.044715, %v2705_v42  ;;  %v2708_v8 = vadd.f32 %v2972_v40, %v2707_v45  ;;  %v3357_v47 = vpop.f32.mrb[87].mxu1  ;;  %v2711_v52 = vmul.f32 0.5, %v2705_v42 }
0x20e6   :  { %v2715_v60 = vmul.f32 %v2713_v46, %v2705_v42  ;;  %v2714_v61 = vmul.f32 0.044715, %v2708_v8  ;;  %v2712_v54 = vmul.f32 0.5, %v2708_v8 }
0x20e8   :  { %v2717_v48 = vmul.f32 %v2715_v60, %v2705_v42  ;;  %v2716_v4 = vmul.f32 %v2714_v61, %v2708_v8 }
0x20ea   :  { %v2719_v15 = vadd.f32 %v2717_v48, %v2705_v42  ;;  %v2718_v20 = vmul.f32 %v2716_v4, %v2708_v8 }
0x20ec   :  { %v2721_v32 = vmul.f32 0.7978846, %v2719_v15  ;;  %v2720_v2 = vadd.f32 %v2718_v20, %v2708_v8 }
0x20ee   :  { %3533 = vtanh.f32 %v2721_v32  ;;  %v2722_v5 = vmul.f32 0.7978846, %v2720_v2 }
0x20f0   :  { %3535 = vtanh.f32 %v2722_v5 }
0x20f8   :  { %v3534_v49 = vpop.eup %3533 }
0x20f9   :  { %v2725_v51 = vadd.f32 1.0, %v3534_v49 }
0x20fa   :  { %v3536_v25 = vpop.eup %3535 }
0x20fb   :  { %v2726_v33 = vadd.f32 1.0, %v3536_v25  ;;  %v2727_v55 = vmul.f32 %v2725_v51, %v2711_v52 }
0x20fd   :  { %v2728_v56 = vmul.f32 %v2726_v33, %v2712_v54 }
0x20ff   :  { %v2729_v57 = vpack.c.bf16 %v2728_v56, %v2727_v55 }
0x2101   :  { %3367 = vmatmul.mubr.msk.bf16.vlgmr.msra.gmra.mrb[72].mxu0 %vm1457_vm9, %v2729_v57 }
0x21d4   :  { %v2795_v34 = vpop.f32.mrb[72].mxu0 }
0x21d5   :  { %v2796_v21 = vadd.f32 %v2795_v34, %v2733_v58  ;;  %v3368_v18 = vpop.f32.mrb[73].mxu0 }
0x21d6   :  { %v2798_v35 = vpop.f32.mrb[74].mxu0 }
0x21d7   :  { %v2802_v36 = vadd.f32 %v2796_v21, %v2646_v29  ;;  %v2799_v59 = vadd.f32 %v2798_v35, %v2733_v58  ;;  %v3369_v62 = vpop.f32.mrb[75].mxu0  ;;  %v2833_v29 = vrot.slane %v4212_v30, %v1532_v10 }
0x21d9   :  { %v2804_v63 = vsel %vm168_vm4, %v2802_v36, 0.0  ;;  %v2803_v27 = vadd.f32 %v2799_v59, %v2647_v31 }
0x21da   :  { %2805 = vadd.xlane.f32.xlu0 %v2804_v63 }
0x21db   :  { %v2807_v28 = vsel %vm168_vm4, %v2803_v27, 0.0 }
0x21dc   :  { %2808 = vadd.xlane.f32.xlu1 %v2807_v28 }
0x2267   :  { %v2806_v0 = vpop.xlane.xlu0 %2805 }
0x2268   :  { %v2810_v1 = vmul.f32 0.03125, %v2806_v0 }
0x2269   :  { %v2809_v3 = vpop.xlane.xlu1 %2808 }
0x226a   :  { %v2812_v6 = vsub.f32 %v2802_v36, %v2810_v1  ;;  %v2811_v7 = vmul.f32 0.03125, %v2809_v3 }
0x226c   :  { %v2813_v43 = vsub.f32 %v2803_v27, %v2811_v7  ;;  %v2814_v9 = vmul.f32 %v2812_v6, %v2812_v6 }
0x226e   :  { %v2816_v37 = vsel %vm168_vm4, %v2814_v9, 0.0  ;;  %v2815_v12 = vmul.f32 %v2813_v43, %v2813_v43 }
0x226f   :  { %2817 = vadd.xlane.f32.xlu0 %v2816_v37 }
0x2270   :  { %v2819_v14 = vsel %vm168_vm4, %v2815_v12, 0.0 }
0x2271   :  { %2820 = vadd.xlane.f32.xlu1 %v2819_v14 }
0x22fc   :  { %v2818_v16 = vpop.xlane.xlu0 %2817 }
0x22fd   :  { %v2822_v19 = vmul.f32 0.03125, %v2818_v16 }
0x22fe   :  { %v2821_v22 = vpop.xlane.xlu1 %2820 }
0x22ff   :  { %v2824_v23 = vadd.f32 1e-12, %v2822_v19  ;;  %v2823_v24 = vmul.f32 0.03125, %v2821_v22 }
0x2301   :  { %3537 = vrsqrt.f32 %v2824_v23  ;;  %v2825_v26 = vadd.f32 1e-12, %v2823_v24 }
0x2303   :  { %3539 = vrsqrt.f32 %v2825_v26 }
0x230b   :  { %v3538_v31 = vpop.eup %3537 }
0x230c   :  { %v2828_v11 = vmul.f32 %v3538_v31, %v2812_v6 }
0x230d   :  { %v3540_v50 = vpop.eup %3539 }
0x230e   :  { %v2834_v53 = vmul.f32 %v2833_v29, %v2828_v11  ;;  %v2829_v39 = vmul.f32 %v3540_v50, %v2813_v43 }
0x2310   :  { %v2835_v40 = vmul.f32 %v2833_v29, %v2829_v39  ;;  %v2840_v41 = vadd.f32 %v2839_v38, %v2834_v53 }
0x2312   :  { %v2841_v42 = vadd.f32 %v2839_v38, %v2835_v40  ;;  %v2842_v44 = vsel %vm168_vm4, %v2840_v41, 0.0 }
0x2313   :  { %v2843_v45 = vrot.slane %v2842_v44, 4 }
0x2314   :  { %v2849_v46 = vsel %vm168_vm4, %v2841_v42, 0.0 }
0x2315   :  { %v2844_v8 = vadd.f32 %v2843_v45, %v2842_v44  ;;  %v2850_v47 = vrot.slane %v2849_v46, 4 }
0x2317   :  { %v2845_v10 = vrot.slane %v2844_v8, 2  ;;  %v2851_v60 = vadd.f32 %v2850_v47, %v2849_v46 }
0x2319   :  { %v2846_v61 = vadd.f32 %v2845_v10, %v2844_v8  ;;  %v2852_v48 = vrot.slane %v2851_v60, 2 }
0x231b   :  { %v2847_v17 = vrot.slane %v2846_v61, 1  ;;  %v2853_v4 = vadd.f32 %v2852_v48, %v2851_v60 }
0x231d   :  { %v2848_v13 = vadd.f32 %v2847_v17, %v2846_v61  ;;  %v2854_v30 = vrot.slane %v2853_v4, 1 }
0x231f   :  { %v2855_v15 = vadd.f32 %v2854_v30, %v2853_v4  ;;  %v2857_v20 = vmul.f32 0.125, %v2848_v13 }
0x2321   :  { %v2858_v32 = vmul.f32 0.125, %v2855_v15 }
0x2323   :  { %v2862_v2 = vsel %vm2861_vm10, %v2858_v32, %v2857_v20 }
0x2324   :  { %2865 = vst.msk [vmem:[#allocation2] sm:$0x3] %vm2864_vm11, %v2862_v2 }
0x2325   :  { %3552 = shalt.err (!%p3549_p4)
}
0x2326   :  { %s3553_s20 = scalar_lea.hbm %s4291_s11, 32 }
0x2327   :  { %p3554_p5 = scmp.ne.s32.totalorder %s4291_s11, %s3553_s20  ;;  %p3557_p6 = scmp.lt.u32.totalorder %s3553_s20, %s4291_s11 }
0x2329   :  { %p3559_p7 = pnand %p3557_p6, %p3554_p5 }
0x232b   :  { %3562 = shalt.err (!%p3559_p7)
}
0x232c   :  { %2875 = dma.vmem_to_hbm [thread:$0]  %s2873_s9, 32, %s4291_s11, [#allocation3]  }
0x232d   :  { %3563 = dma.done.wait [#allocation3], 32  }
0x232e   :  { %3564 = vsyncadd [#allocation3], 4294967264 }
0x232f   :  { %2879 = vsyncpa [#allocation3], 1 }

</bundles_post_ra>
